<compile_context>
chip_gen: v7x
topology: tpu7x:2x2x1
jax: 0.10.0
libtpu: 0.0.40
codegen_flags: <defaults>
</compile_context>

<pallas_src>
import functools

import jax
import jax.numpy as jnp
from jax.experimental import pallas as pl
from jax.experimental.pallas import tpu as pltpu

LANE = 128
SUBLANE = 8


# ---------------------------------------------------------------------------
# Stage 1: input projection  x_proj = x_flat @ W_in + bias   (parallel)
# ---------------------------------------------------------------------------
def _input_proj_kernel(x_ref, wi_ref, b_ref, o_ref):
    o_ref[...] = (
        jnp.dot(x_ref[...], wi_ref[...], preferred_element_type=jnp.float32)
        + b_ref[...]
    ).astype(o_ref.dtype)


# ---------------------------------------------------------------------------
# Stage 2: the recurrence (sequential over time chunks)
# ---------------------------------------------------------------------------
def _make_recurrent_kernel(unroll):
    def kernel(xp_ref, h0_ref, c0_ref, wh_ref, hs_ref, cs_ref, h_sc, c_sc):
        t_chunk = pl.program_id(1)

        @pl.when(t_chunk == 0)
        def _():
            # Seed the running state once per batch block.
            h_sc[...] = h0_ref[...].astype(jnp.float32)
            c_sc[...] = c0_ref[...].astype(jnp.float32)

        n_steps = xp_ref.shape[1]        # timesteps in this chunk (static)
        Hp = h_sc.shape[-1]              # lane-aligned hidden size
        mxu_dtype = wh_ref.dtype         # bf16 (or f32 on the exact path)

        def sigmoid(z):                  # 1 EUP pass instead of exp + recip
            return 0.5 * jnp.tanh(0.5 * z) + 0.5

        def step(t, carry):
            h, c = carry                 # f32 (Bb, Hp)
            # Serial critical path: one (Bb,Hp)x(Hp,4Hp) MXU matmul (bf16
            # operands, f32 accumulation) plus the gate nonlinearities.
            gates = xp_ref[:, t, :].astype(jnp.float32) + jnp.dot(
                h.astype(mxu_dtype), wh_ref[...],
                preferred_element_type=jnp.float32)
            f = sigmoid(gates[:, 0 * Hp:1 * Hp])
            i = sigmoid(gates[:, 1 * Hp:2 * Hp])
            o = sigmoid(gates[:, 2 * Hp:3 * Hp])
            g = jnp.tanh(gates[:, 3 * Hp:4 * Hp])
            c_new = f * c + i * g
            h_new = jnp.tanh(c_new) * o
            hs_ref[:, t, :] = h_new.astype(hs_ref.dtype)
            cs_ref[:, t, :] = c_new.astype(cs_ref.dtype)
            return h_new, c_new

        # unroll=True keeps t static (lane/sublane-static stores).  For very
        # large Bb*Hp this may spill vregs -- pass unroll=4/8 and re-measure.
        h_fin, c_fin = jax.lax.fori_loop(
            0, n_steps, step, (h_sc[...], c_sc[...]), unroll=unroll)
        h_sc[...] = h_fin
        c_sc[...] = c_fin

    return kernel


# ---------------------------------------------------------------------------
# Wrapper helpers
# ---------------------------------------------------------------------------
def _round_up(x, m):
    return ((x + m - 1) // m) * m


def _largest_aligned_divisor(n, align, cap):
    best = None
    d = align
    while d <= min(n, cap):
        if n % d == 0:
            best = d
        d += align
    return best


def _clamp_vmem(nbytes):
    # Default scoped limits (16/32 MiB) are often too small; stay under v7x's
    # 64 MiB physical VMEM with headroom.
    return int(min(max(nbytes + nbytes // 4, 16 * 1024 * 1024),
                   60 * 1024 * 1024))


def _pad_gates_last(w, H, Hp):
    """w: (..., 4H) packed [f,i,o,g]; zero-pad each gate block to Hp."""
    if Hp == H:
        return w
    parts = [w[..., k * H:(k + 1) * H] for k in range(4)]
    pad = [(0, 0)] * (w.ndim - 1) + [(0, Hp - H)]
    return jnp.concatenate([jnp.pad(p, pad) for p in parts], axis=-1)


# ---------------------------------------------------------------------------
# Forward wrapper
# ---------------------------------------------------------------------------
def lstm_cell_forward(x, h0, c0, w_in, w_hid, bias, *,
                      time_chunk=None, batch_block=None,
                      mxu_dtype=jnp.bfloat16,
                      vmem_budget_bytes=48 * 1024 * 1024,
                      unroll=True):
    """x: (B, T, D); h0, c0: (B, H); w_in: (D, 4H); w_hid: (H, 4H);
    bias: (4H,) or (1, 4H), gate order [forget, input, output, cell].
    Returns (hiddens, cells), each (B, T, H)."""
    B, T, D = x.shape
    H = h0.shape[-1]

    # ---- lane-align the hidden size (zero padding is inert for the math) ----
    Hp = _round_up(H, LANE)
    G = 4 * Hp
    w_in_p = _pad_ates = _pad_gates_last(w_in, H, Hp).astype(mxu_dtype)   # (D, G)
    w_hid_p = _pad_gates_last(w_hid, H, Hp)
    w_hid_p = jnp.pad(w_hid_p, ((0, Hp - H), (0, 0))).astype(mxu_dtype)   # (Hp, G)
    bias_p = _pad_gates_last(bias.reshape(1, 4 * H), H, Hp)
    bias_p = bias_p.astype(jnp.float32)                                   # (1, G)
    h0_p = jnp.pad(h0, ((0, 0), (0, Hp - H))).astype(jnp.float32)
    c0_p = jnp.pad(c0, ((0, 0), (0, Hp - H))).astype(jnp.float32)

    mxu_bytes = jnp.dtype(mxu_dtype).itemsize
    out_dtype = x.dtype
    out_bytes = jnp.dtype(out_dtype).itemsize

    # ---------------- Stage 1: hoisted input projection ----------------
    rows = B * T
    x_flat = x.reshape(rows, D).astype(mxu_dtype)
    tm = _largest_aligned_divisor(rows, SUBLANE, 512) or rows
    vmem_s1 = 2 * (tm * D * mxu_bytes + D * G * mxu_bytes + G * 4
                   + tm * G * mxu_bytes)
    x_proj = pl.pallas_call(
        _input_proj_kernel,
        out_shape=jax.ShapeDtypeStruct((rows, G), mxu_dtype),
        grid_spec=pltpu.PrefetchScalarGridSpec(
            num_scalar_prefetch=0,
            grid=(rows // tm,),
            in_specs=[
                pl.BlockSpec((tm, D), lambda i: (i, 0)),     # x rows tile
                pl.BlockSpec((D, G), lambda i: (0, 0)),      # W_in
                pl.BlockSpec((1, G), lambda i: (0, 0)),      # bias
            ],
            out_specs=pl.BlockSpec((tm, G), lambda i: (i, 0)),
        ),
        compiler_params=pltpu.CompilerParams(
            dimension_semantics=("parallel",),
            vmem_limit_bytes=_clamp_vmem(vmem_s1)),
    )(x_flat, w_in_p, bias_p)
    x_proj = x_proj.reshape(B, T, G)

    # ---------------- Stage 2: sequential recurrence ----------------
    if batch_block is None:
        # Split the batch across two TensorCores (v7x) when it is big enough;
        # single-TC chips just get one extra cheap grid iteration per chunk.
        Bb = B // 2 if (B >= 16 and (B // 2) % SUBLANE == 0) else B
    else:
        Bb = batch_block
    if B % Bb != 0 or not (Bb == B or Bb % SUBLANE == 0):
        raise ValueError(f"batch_block={Bb} must divide B={B} and be either "
                         f"B or a multiple of {SUBLANE}")

    def stage2_vmem(Tc_):
        xp_blk = Bb * Tc_ * G * mxu_bytes            # x_proj chunk
        out_blk = Bb * Tc_ * Hp * out_bytes          # each output chunk
        st_blk = Bb * Hp * 4                         # h0/c0 block & scratch
        w_blk = Hp * G * mxu_bytes                   # W_hid
        return (2 * xp_blk + 2 * 2 * st_blk + 2 * w_blk
                + 2 * 2 * out_blk + 2 * st_blk)

    if time_chunk is None:
        aligned = [d for d in range(SUBLANE, min(T, 128) + 1, SUBLANE)
                   if T % d == 0]
        fitting = [d for d in aligned if stage2_vmem(d) <= vmem_budget_bytes]
        if fitting:
            Tc = fitting[-1]
        elif aligned:
            Tc = aligned[0]
        else:
            Tc = T            # full-sequence block is always a legal shape
    else:
        Tc = time_chunk
    if T % Tc != 0:
        raise ValueError(f"time_chunk={Tc} must divide T={T}")

    hiddens_p, cells_p = pl.pallas_call(
        _make_recurrent_kernel(unroll),
        out_shape=(jax.ShapeDtypeStruct((B, T, Hp), out_dtype),
                   jax.ShapeDtypeStruct((B, T, Hp), out_dtype)),
        grid_spec=pltpu.PrefetchScalarGridSpec(
            num_scalar_prefetch=0,
            grid=(B // Bb, T // Tc),
            in_specs=[
                pl.BlockSpec((Bb, Tc, G), lambda b, t: (b, t, 0)),  # x_proj chunk
                pl.BlockSpec((Bb, Hp), lambda b, t: (b, 0)),        # h0
                pl.BlockSpec((Bb, Hp), lambda b, t: (b, 0)),        # c0
                # W_hid: constant block index -> pipeliner DMAs it exactly
                # once and overlaps it with the first x_proj chunk fetch.
                pl.BlockSpec((Hp, G), lambda b, t: (0, 0)),
            ],
            out_specs=[
                pl.BlockSpec((Bb, Tc, Hp), lambda b, t: (b, t, 0)),
                pl.BlockSpec((Bb, Tc, Hp), lambda b, t: (b, t, 0)),
            ],
            scratch_shapes=[
                pltpu.VMEM((Bb, Hp), jnp.float32),   # running h (f32)
                pltpu.VMEM((Bb, Hp), jnp.float32),   # running c (f32)
            ],
        ),
        compiler_params=pltpu.CompilerParams(
            dimension_semantics=("parallel", "arbitrary"),
            vmem_limit_bytes=_clamp_vmem(stage2_vmem(Tc))),
    )(x_proj, h0_p, c0_p, w_hid_p)

    return hiddens_p[..., :H], cells_p[..., :H]


# ---------------------------------------------------------------------------
# Parameters & pure-JAX reference
# ---------------------------------------------------------------------------
def xavier_uniform(key, shape):
    fan_in, fan_out = shape
    bound = jnp.sqrt(6.0 / (fan_in + fan_out))
    return jax.random.uniform(key, shape, jnp.float32, minval=-bound, maxval=bound)


def make_params(key, input_dim, hidden_dim):
    # Gate order matches the kernel slicing: [forget, input, output, cell].
    keys = jax.random.split(key, 9)
    w_in = jnp.concatenate([xavier_uniform(keys[i], (input_dim, hidden_dim))
                            for i in range(4)], axis=1)            # (D, 4H)
    w_hid = jnp.concatenate([xavier_uniform(keys[4 + i], (hidden_dim, hidden_dim))
                             for i in range(4)], axis=1)           # (H, 4H)
    # PyTorch inits the biases to zero; use small random values here so the
    # bias path is actually exercised by the numerical check.
    bias = jax.random.uniform(keys[8], (4 * hidden_dim,), jnp.float32,
                              minval=-0.1, maxval=0.1)
    return w_in, w_hid, bias


def reference_lstm(x, h, c, w_in, w_hid, bias):
    """Pure-JAX reference mirroring the PyTorch forward."""
    H = h.shape[-1]
    hs, cs = [], []
    for t in range(x.shape[1]):
        gates = x[:, t] @ w_in + h @ w_hid + bias
        f = jax.nn.sigmoid(gates[:, 0 * H:1 * H])
        i = jax.nn.sigmoid(gates[:, 1 * H:2 * H])
        o = jax.nn.sigmoid(gates[:, 2 * H:3 * H])
        g = jnp.tanh(gates[:, 3 * H:4 * H])
        c = f * c + i * g
        h = jnp.tanh(c) * o
        hs.append(h[:, None])
        cs.append(c[:, None])
    return jnp.concatenate(hs, axis=1), jnp.concatenate(cs, axis=1)


if __name__ == "__main__":
    B, T, D, H = 2, 8, 4, 32
    key = jax.random.PRNGKey(0)
    kx, kh, kc, kp = jax.random.split(key, 4)

    x = jax.random.normal(kx, (B, T, D), jnp.float32)
    h0 = jax.random.normal(kh, (B, H), jnp.float32)
    c0 = jax.random.normal(kc, (B, H), jnp.float32)
    w_in, w_hid, bias = make_params(kp, D, H)

    ref_h, ref_c = reference_lstm(x, h0, c0, w_in, w_hid, bias)

    # Exact-precision path (f32 MXU operands): must match the reference tightly.
    f32_fwd = jax.jit(functools.partial(lstm_cell_forward, mxu_dtype=jnp.float32))
    h_f32, c_f32 = f32_fwd(x, h0, c0, w_in, w_hid, bias)
    jax.block_until_ready((h_f32, c_f32))
    assert jnp.allclose(h_f32, ref_h, atol=1e-5, rtol=1e-5)
    assert jnp.allclose(c_f32, ref_c, atol=1e-5, rtol=1e-5)

    # Default fast path: bf16 MXU operands (f32 accumulation / gate math).
    # bf16 rounding compounds over T, so tolerances are looser.
    fast_fwd = jax.jit(lstm_cell_forward)
    h_fast, c_fast = fast_fwd(x, h0, c0, w_in, w_hid, bias)
    jax.block_until_ready((h_fast, c_fast))
    assert jnp.allclose(h_fast, ref_h, atol=3e-2, rtol=3e-2)
    assert jnp.allclose(c_fast, ref_c, atol=3e-2, rtol=3e-2)

    print("KERNEL_OK")
</pallas_src>

<mosaic_0001>
module attributes {stable_mosaic.version = 11 : i64} {
  func.func @_input_proj_kernel(%arg0: i32, %arg1: memref<16x4xf32, #tpu.memory_space<vmem>>, %arg2: memref<4x512xf32, #tpu.memory_space<vmem>>, %arg3: memref<1x512xf32, #tpu.memory_space<vmem>>, %arg4: memref<16x512xf32, #tpu.memory_space<vmem>>) attributes {dimension_semantics = [#tpu.dimension_semantics<parallel>], iteration_bounds = array<i64: 1>, scalar_prefetch = 0 : i64, scratch_operands = 0 : i64, tpu.core_type = #tpu.core_type<tc>, window_params = [{transform_indices = @transform_0, window_bounds = array<i64: 16, 4>}, {pipeline_mode = #tpu.pipeline_mode<synchronous>, transform_indices = @transform_1, window_bounds = array<i64: 4, 512>}, {pipeline_mode = #tpu.pipeline_mode<synchronous>, transform_indices = @transform_2, window_bounds = array<i64: 1, 512>}, {transform_indices = @transform_3, window_bounds = array<i64: 16, 512>}]} {
    %c0 = arith.constant 0 : index
    %c0_0 = arith.constant 0 : index
    %0 = vector.load %arg1[%c0, %c0_0] : memref<16x4xf32, #tpu.memory_space<vmem>>, vector<16x4xf32>
    %c0_1 = arith.constant 0 : index
    %c0_2 = arith.constant 0 : index
    %1 = vector.load %arg2[%c0_1, %c0_2] : memref<4x512xf32, #tpu.memory_space<vmem>>, vector<4x512xf32>
    %cst = arith.constant dense<0.000000e+00> : vector<16x512xf32>
    %2 = tpu.matmul %0, %1, %cst {dimension_numbers = #tpu.dot_dimension_numbers<[1], [0], [0], [1], [0, 0, 1, 1], [], []>} : vector<16x4xf32>, vector<4x512xf32>, vector<16x512xf32> -> vector<16x512xf32>
    %c0_3 = arith.constant 0 : index
    %c0_4 = arith.constant 0 : index
    %3 = vector.load %arg3[%c0_3, %c0_4] : memref<1x512xf32, #tpu.memory_space<vmem>>, vector<1x512xf32>
    %4 = vector.broadcast %3 : vector<1x512xf32> to vector<16x512xf32>
    %5 = arith.addf %2, %4 : vector<16x512xf32>
    %c0_5 = arith.constant 0 : index
    %c0_6 = arith.constant 0 : index
    %6 = vector.load %arg4[%c0_5, %c0_6] : memref<16x512xf32, #tpu.memory_space<vmem>>, vector<16x512xf32>
    tpu.vector_store %arg4[%c0_5, %c0_6], %5 {strides = array<i32>} : memref<16x512xf32, #tpu.memory_space<vmem>>, vector<16x512xf32>,
    return
  }
  func.func @transform_0(%arg0: i32) -> (i32, i32) {
    %c0_i32 = arith.constant 0 : i32
    %c0_i32_0 = arith.constant 0 : i32
    return %arg0, %c0_i32 : i32, i32
  }
  func.func @transform_1(%arg0: i32) -> (i32, i32) {
    %c0_i32 = arith.constant 0 : i32
    %c0_i32_0 = arith.constant 0 : i32
    %c0_i32_1 = arith.constant 0 : i32
    return %c0_i32, %c0_i32_0 : i32, i32
  }
  func.func @transform_2(%arg0: i32) -> (i32, i32) {
    %c0_i32 = arith.constant 0 : i32
    %c0_i32_0 = arith.constant 0 : i32
    %c0_i32_1 = arith.constant 0 : i32
    return %c0_i32, %c0_i32_0 : i32, i32
  }
  func.func @transform_3(%arg0: i32) -> (i32, i32) {
    %c0_i32 = arith.constant 0 : i32
    %c0_i32_0 = arith.constant 0 : i32
    return %arg0, %c0_i32 : i32, i32
  }
}

module attributes {stable_mosaic.version = 11 : i64} {
  func.func @kernel(%arg0: i32, %arg1: i32, %arg2: memref<2x8x512xf32, #tpu.memory_space<vmem>>, %arg3: memref<2x128xf32, #tpu.memory_space<vmem>>, %arg4: memref<2x128xf32, #tpu.memory_space<vmem>>, %arg5: memref<128x512xf32, #tpu.memory_space<vmem>>, %arg6: memref<2x8x128xf32, #tpu.memory_space<vmem>>, %arg7: memref<2x8x128xf32, #tpu.memory_space<vmem>>, %arg8: memref<2x128xf32, #tpu.memory_space<vmem>>, %arg9: memref<2x128xf32, #tpu.memory_space<vmem>>) attributes {dimension_semantics = [#tpu.dimension_semantics<parallel>, #tpu.dimension_semantics<arbitrary>], iteration_bounds = array<i64: 1, 1>, scalar_prefetch = 0 : i64, scratch_operands = 2 : i64, tpu.core_type = #tpu.core_type<tc>, window_params = [{transform_indices = @transform_0, window_bounds = array<i64: 2, 8, 512>}, {transform_indices = @transform_1, window_bounds = array<i64: 2, 128>}, {transform_indices = @transform_2, window_bounds = array<i64: 2, 128>}, {pipeline_mode = #tpu.pipeline_mode<synchronous>, transform_indices = @transform_3, window_bounds = array<i64: 128, 512>}, {transform_indices = @transform_4, window_bounds = array<i64: 2, 8, 128>}, {transform_indices = @transform_5, window_bounds = array<i64: 2, 8, 128>}]} {
    %c0_i32 = arith.constant 0 : i32
    %0 = arith.cmpi eq, %arg1, %c0_i32 : i32
    %1 = arith.extui %0 : i1 to i32
    %c0_i32_0 = arith.constant 0 : i32
    %2 = arith.cmpi ne, %1, %c0_i32_0 : i32
    scf.if %2 {
      %c0_152 = arith.constant 0 : index
      %c0_153 = arith.constant 0 : index
      %367 = vector.load %arg3[%c0_152, %c0_153] : memref<2x128xf32, #tpu.memory_space<vmem>>, vector<2x128xf32>
      %c0_154 = arith.constant 0 : index
      %c0_155 = arith.constant 0 : index
      %368 = vector.load %arg8[%c0_154, %c0_155] : memref<2x128xf32, #tpu.memory_space<vmem>>, vector<2x128xf32>
      tpu.vector_store %arg8[%c0_154, %c0_155], %367 {strides = array<i32>} : memref<2x128xf32, #tpu.memory_space<vmem>>, vector<2x128xf32>,
      %c0_156 = arith.constant 0 : index
      %c0_157 = arith.constant 0 : index
      %369 = vector.load %arg4[%c0_156, %c0_157] : memref<2x128xf32, #tpu.memory_space<vmem>>, vector<2x128xf32>
      %c0_158 = arith.constant 0 : index
      %c0_159 = arith.constant 0 : index
      %370 = vector.load %arg9[%c0_158, %c0_159] : memref<2x128xf32, #tpu.memory_space<vmem>>, vector<2x128xf32>
      tpu.vector_store %arg9[%c0_158, %c0_159], %369 {strides = array<i32>} : memref<2x128xf32, #tpu.memory_space<vmem>>, vector<2x128xf32>,
    } else {
    }
    %c0 = arith.constant 0 : index
    %c0_1 = arith.constant 0 : index
    %3 = vector.load %arg8[%c0, %c0_1] : memref<2x128xf32, #tpu.memory_space<vmem>>, vector<2x128xf32>
    %c0_2 = arith.constant 0 : index
    %c0_3 = arith.constant 0 : index
    %4 = vector.load %arg9[%c0_2, %c0_3] : memref<2x128xf32, #tpu.memory_space<vmem>>, vector<2x128xf32>
    %c0_i32_4 = arith.constant 0 : i32
    %c0_5 = arith.constant 0 : index
    %5 = arith.index_cast %c0_i32_4 : i32 to index
    %c0_6 = arith.constant 0 : index
    %6 = vector.load %arg2[%c0_5, %5, %c0_6] : memref<2x8x512xf32, #tpu.memory_space<vmem>>, vector<2x1x512xf32>
    %7 = vector.shape_cast %6 : vector<2x1x512xf32> to vector<2x512xf32>
    %c0_7 = arith.constant 0 : index
    %c0_8 = arith.constant 0 : index
    %8 = vector.load %arg5[%c0_7, %c0_8] : memref<128x512xf32, #tpu.memory_space<vmem>>, vector<128x512xf32>
    %cst = arith.constant dense<0.000000e+00> : vector<2x512xf32>
    %9 = tpu.matmul %3, %8, %cst {dimension_numbers = #tpu.dot_dimension_numbers<[1], [0], [0], [1], [0, 0, 1, 1], [], []>} : vector<2x128xf32>, vector<128x512xf32>, vector<2x512xf32> -> vector<2x512xf32>
    %10 = arith.addf %7, %9 : vector<2x512xf32>
    %11 = vector.extract_strided_slice %10 {offsets = [0, 0], sizes = [2, 128], strides = [1, 1]} : vector<2x512xf32> to vector<2x128xf32>
    %cst_9 = arith.constant 5.000000e-01 : f32
    %12 = vector.broadcast %cst_9 : f32 to vector<2x128xf32>
    %13 = arith.mulf %12, %11 : vector<2x128xf32>
    %14 = math.tanh %13 : vector<2x128xf32>
    %cst_10 = arith.constant 5.000000e-01 : f32
    %15 = vector.broadcast %cst_10 : f32 to vector<2x128xf32>
    %16 = arith.mulf %15, %14 : vector<2x128xf32>
    %cst_11 = arith.constant 5.000000e-01 : f32
    %17 = vector.broadcast %cst_11 : f32 to vector<2x128xf32>
    %18 = arith.addf %16, %17 : vector<2x128xf32>
    %19 = vector.extract_strided_slice %10 {offsets = [0, 128], sizes = [2, 128], strides = [1, 1]} : vector<2x512xf32> to vector<2x128xf32>
    %cst_12 = arith.constant 5.000000e-01 : f32
    %20 = vector.broadcast %cst_12 : f32 to vector<2x128xf32>
    %21 = arith.mulf %20, %19 : vector<2x128xf32>
    %22 = math.tanh %21 : vector<2x128xf32>
    %cst_13 = arith.constant 5.000000e-01 : f32
    %23 = vector.broadcast %cst_13 : f32 to vector<2x128xf32>
    %24 = arith.mulf %23, %22 : vector<2x128xf32>
    %cst_14 = arith.constant 5.000000e-01 : f32
    %25 = vector.broadcast %cst_14 : f32 to vector<2x128xf32>
    %26 = arith.addf %24, %25 : vector<2x128xf32>
    %27 = vector.extract_strided_slice %10 {offsets = [0, 256], sizes = [2, 128], strides = [1, 1]} : vector<2x512xf32> to vector<2x128xf32>
    %cst_15 = arith.constant 5.000000e-01 : f32
    %28 = vector.broadcast %cst_15 : f32 to vector<2x128xf32>
    %29 = arith.mulf %28, %27 : vector<2x128xf32>
    %30 = math.tanh %29 : vector<2x128xf32>
    %cst_16 = arith.constant 5.000000e-01 : f32
    %31 = vector.broadcast %cst_16 : f32 to vector<2x128xf32>
    %32 = arith.mulf %31, %30 : vector<2x128xf32>
    %cst_17 = arith.constant 5.000000e-01 : f32
    %33 = vector.broadcast %cst_17 : f32 to vector<2x128xf32>
    %34 = arith.addf %32, %33 : vector<2x128xf32>
    %35 = vector.extract_strided_slice %10 {offsets = [0, 384], sizes = [2, 128], strides = [1, 1]} : vector<2x512xf32> to vector<2x128xf32>
    %36 = math.tanh %35 : vector<2x128xf32>
    %37 = arith.mulf %18, %4 : vector<2x128xf32>
    %38 = arith.mulf %26, %36 : vector<2x128xf32>
    %39 = arith.addf %37, %38 : vector<2x128xf32>
    %40 = math.tanh %39 : vector<2x128xf32>
    %41 = arith.mulf %40, %34 : vector<2x128xf32>
    %c0_18 = arith.constant 0 : index
    %42 = arith.index_cast %c0_i32_4 : i32 to index
    %c0_19 = arith.constant 0 : index
    %43 = vector.load %arg6[%c0_18, %42, %c0_19] : memref<2x8x128xf32, #tpu.memory_space<vmem>>, vector<2x1x128xf32>
    %44 = vector.shape_cast %43 : vector<2x1x128xf32> to vector<2x128xf32>
    %45 = vector.shape_cast %41 : vector<2x128xf32> to vector<2x1x128xf32>
    tpu.vector_store %arg6[%c0_18, %42, %c0_19], %45 {strides = array<i32>} : memref<2x8x128xf32, #tpu.memory_space<vmem>>, vector<2x1x128xf32>,
    %c0_20 = arith.constant 0 : index
    %46 = arith.index_cast %c0_i32_4 : i32 to index
    %c0_21 = arith.constant 0 : index
    %47 = vector.load %arg7[%c0_20, %46, %c0_21] : memref<2x8x128xf32, #tpu.memory_space<vmem>>, vector<2x1x128xf32>
    %48 = vector.shape_cast %47 : vector<2x1x128xf32> to vector<2x128xf32>
    %49 = vector.shape_cast %39 : vector<2x128xf32> to vector<2x1x128xf32>
    tpu.vector_store %arg7[%c0_20, %46, %c0_21], %49 {strides = array<i32>} : memref<2x8x128xf32, #tpu.memory_space<vmem>>, vector<2x1x128xf32>,
    %c1_i32 = arith.constant 1 : i32
    %c0_22 = arith.constant 0 : index
    %50 = arith.index_cast %c1_i32 : i32 to index
    %c0_23 = arith.constant 0 : index
    %51 = vector.load %arg2[%c0_22, %50, %c0_23] : memref<2x8x512xf32, #tpu.memory_space<vmem>>, vector<2x1x512xf32>
    %52 = vector.shape_cast %51 : vector<2x1x512xf32> to vector<2x512xf32>
    %c0_24 = arith.constant 0 : index
    %c0_25 = arith.constant 0 : index
    %53 = vector.load %arg5[%c0_24, %c0_25] : memref<128x512xf32, #tpu.memory_space<vmem>>, vector<128x512xf32>
    %cst_26 = arith.constant dense<0.000000e+00> : vector<2x512xf32>
    %54 = tpu.matmul %41, %53, %cst_26 {dimension_numbers = #tpu.dot_dimension_numbers<[1], [0], [0], [1], [0, 0, 1, 1], [], []>} : vector<2x128xf32>, vector<128x512xf32>, vector<2x512xf32> -> vector<2x512xf32>
    %55 = arith.addf %52, %54 : vector<2x512xf32>
    %56 = vector.extract_strided_slice %55 {offsets = [0, 0], sizes = [2, 128], strides = [1, 1]} : vector<2x512xf32> to vector<2x128xf32>
    %cst_27 = arith.constant 5.000000e-01 : f32
    %57 = vector.broadcast %cst_27 : f32 to vector<2x128xf32>
    %58 = arith.mulf %57, %56 : vector<2x128xf32>
    %59 = math.tanh %58 : vector<2x128xf32>
    %cst_28 = arith.constant 5.000000e-01 : f32
    %60 = vector.broadcast %cst_28 : f32 to vector<2x128xf32>
    %61 = arith.mulf %60, %59 : vector<2x128xf32>
    %cst_29 = arith.constant 5.000000e-01 : f32
    %62 = vector.broadcast %cst_29 : f32 to vector<2x128xf32>
    %63 = arith.addf %61, %62 : vector<2x128xf32>
    %64 = vector.extract_strided_slice %55 {offsets = [0, 128], sizes = [2, 128], strides = [1, 1]} : vector<2x512xf32> to vector<2x128xf32>
    %cst_30 = arith.constant 5.000000e-01 : f32
    %65 = vector.broadcast %cst_30 : f32 to vector<2x128xf32>
    %66 = arith.mulf %65, %64 : vector<2x128xf32>
    %67 = math.tanh %66 : vector<2x128xf32>
    %cst_31 = arith.constant 5.000000e-01 : f32
    %68 = vector.broadcast %cst_31 : f32 to vector<2x128xf32>
    %69 = arith.mulf %68, %67 : vector<2x128xf32>
    %cst_32 = arith.constant 5.000000e-01 : f32
    %70 = vector.broadcast %cst_32 : f32 to vector<2x128xf32>
    %71 = arith.addf %69, %70 : vector<2x128xf32>
    %72 = vector.extract_strided_slice %55 {offsets = [0, 256], sizes = [2, 128], strides = [1, 1]} : vector<2x512xf32> to vector<2x128xf32>
    %cst_33 = arith.constant 5.000000e-01 : f32
    %73 = vector.broadcast %cst_33 : f32 to vector<2x128xf32>
    %74 = arith.mulf %73, %72 : vector<2x128xf32>
    %75 = math.tanh %74 : vector<2x128xf32>
    %cst_34 = arith.constant 5.000000e-01 : f32
    %76 = vector.broadcast %cst_34 : f32 to vector<2x128xf32>
    %77 = arith.mulf %76, %75 : vector<2x128xf32>
    %cst_35 = arith.constant 5.000000e-01 : f32
    %78 = vector.broadcast %cst_35 : f32 to vector<2x128xf32>
    %79 = arith.addf %77, %78 : vector<2x128xf32>
    %80 = vector.extract_strided_slice %55 {offsets = [0, 384], sizes = [2, 128], strides = [1, 1]} : vector<2x512xf32> to vector<2x128xf32>
    %81 = math.tanh %80 : vector<2x128xf32>
    %82 = arith.mulf %63, %39 : vector<2x128xf32>
    %83 = arith.mulf %71, %81 : vector<2x128xf32>
    %84 = arith.addf %82, %83 : vector<2x128xf32>
    %85 = math.tanh %84 : vector<2x128xf32>
    %86 = arith.mulf %85, %79 : vector<2x128xf32>
    %c0_36 = arith.constant 0 : index
    %87 = arith.index_cast %c1_i32 : i32 to index
    %c0_37 = arith.constant 0 : index
    %88 = vector.load %arg6[%c0_36, %87, %c0_37] : memref<2x8x128xf32, #tpu.memory_space<vmem>>, vector<2x1x128xf32>
    %89 = vector.shape_cast %88 : vector<2x1x128xf32> to vector<2x128xf32>
    %90 = vector.shape_cast %86 : vector<2x128xf32> to vector<2x1x128xf32>
    tpu.vector_store %arg6[%c0_36, %87, %c0_37], %90 {strides = array<i32>} : memref<2x8x128xf32, #tpu.memory_space<vmem>>, vector<2x1x128xf32>,
    %c0_38 = arith.constant 0 : index
    %91 = arith.index_cast %c1_i32 : i32 to index
    %c0_39 = arith.constant 0 : index
    %92 = vector.load %arg7[%c0_38, %91, %c0_39] : memref<2x8x128xf32, #tpu.memory_space<vmem>>, vector<2x1x128xf32>
    %93 = vector.shape_cast %92 : vector<2x1x128xf32> to vector<2x128xf32>
    %94 = vector.shape_cast %84 : vector<2x128xf32> to vector<2x1x128xf32>
    tpu.vector_store %arg7[%c0_38, %91, %c0_39], %94 {strides = array<i32>} : memref<2x8x128xf32, #tpu.memory_space<vmem>>, vector<2x1x128xf32>,
    %c2_i32 = arith.constant 2 : i32
    %c0_40 = arith.constant 0 : index
    %95 = arith.index_cast %c2_i32 : i32 to index
    %c0_41 = arith.constant 0 : index
    %96 = vector.load %arg2[%c0_40, %95, %c0_41] : memref<2x8x512xf32, #tpu.memory_space<vmem>>, vector<2x1x512xf32>
    %97 = vector.shape_cast %96 : vector<2x1x512xf32> to vector<2x512xf32>
    %c0_42 = arith.constant 0 : index
    %c0_43 = arith.constant 0 : index
    %98 = vector.load %arg5[%c0_42, %c0_43] : memref<128x512xf32, #tpu.memory_space<vmem>>, vector<128x512xf32>
    %cst_44 = arith.constant dense<0.000000e+00> : vector<2x512xf32>
    %99 = tpu.matmul %86, %98, %cst_44 {dimension_numbers = #tpu.dot_dimension_numbers<[1], [0], [0], [1], [0, 0, 1, 1], [], []>} : vector<2x128xf32>, vector<128x512xf32>, vector<2x512xf32> -> vector<2x512xf32>
    %100 = arith.addf %97, %99 : vector<2x512xf32>
    %101 = vector.extract_strided_slice %100 {offsets = [0, 0], sizes = [2, 128], strides = [1, 1]} : vector<2x512xf32> to vector<2x128xf32>
    %cst_45 = arith.constant 5.000000e-01 : f32
    %102 = vector.broadcast %cst_45 : f32 to vector<2x128xf32>
    %103 = arith.mulf %102, %101 : vector<2x128xf32>
    %104 = math.tanh %103 : vector<2x128xf32>
    %cst_46 = arith.constant 5.000000e-01 : f32
    %105 = vector.broadcast %cst_46 : f32 to vector<2x128xf32>
    %106 = arith.mulf %105, %104 : vector<2x128xf32>
    %cst_47 = arith.constant 5.000000e-01 : f32
    %107 = vector.broadcast %cst_47 : f32 to vector<2x128xf32>
    %108 = arith.addf %106, %107 : vector<2x128xf32>
    %109 = vector.extract_strided_slice %100 {offsets = [0, 128], sizes = [2, 128], strides = [1, 1]} : vector<2x512xf32> to vector<2x128xf32>
    %cst_48 = arith.constant 5.000000e-01 : f32
    %110 = vector.broadcast %cst_48 : f32 to vector<2x128xf32>
    %111 = arith.mulf %110, %109 : vector<2x128xf32>
    %112 = math.tanh %111 : vector<2x128xf32>
    %cst_49 = arith.constant 5.000000e-01 : f32
    %113 = vector.broadcast %cst_49 : f32 to vector<2x128xf32>
    %114 = arith.mulf %113, %112 : vector<2x128xf32>
    %cst_50 = arith.constant 5.000000e-01 : f32
    %115 = vector.broadcast %cst_50 : f32 to vector<2x128xf32>
    %116 = arith.addf %114, %115 : vector<2x128xf32>
    %117 = vector.extract_strided_slice %100 {offsets = [0, 256], sizes = [2, 128], strides = [1, 1]} : vector<2x512xf32> to vector<2x128xf32>
    %cst_51 = arith.constant 5.000000e-01 : f32
    %118 = vector.broadcast %cst_51 : f32 to vector<2x128xf32>
    %119 = arith.mulf %118, %117 : vector<2x128xf32>
    %120 = math.tanh %119 : vector<2x128xf32>
    %cst_52 = arith.constant 5.000000e-01 : f32
    %121 = vector.broadcast %cst_52 : f32 to vector<2x128xf32>
    %122 = arith.mulf %121, %120 : vector<2x128xf32>
    %cst_53 = arith.constant 5.000000e-01 : f32
    %123 = vector.broadcast %cst_53 : f32 to vector<2x128xf32>
    %124 = arith.addf %122, %123 : vector<2x128xf32>
    %125 = vector.extract_strided_slice %100 {offsets = [0, 384], sizes = [2, 128], strides = [1, 1]} : vector<2x512xf32> to vector<2x128xf32>
    %126 = math.tanh %125 : vector<2x128xf32>
    %127 = arith.mulf %108, %84 : vector<2x128xf32>
    %128 = arith.mulf %116, %126 : vector<2x128xf32>
    %129 = arith.addf %127, %128 : vector<2x128xf32>
    %130 = math.tanh %129 : vector<2x128xf32>
    %131 = arith.mulf %130, %124 : vector<2x128xf32>
    %c0_54 = arith.constant 0 : index
    %132 = arith.index_cast %c2_i32 : i32 to index
    %c0_55 = arith.constant 0 : index
    %133 = vector.load %arg6[%c0_54, %132, %c0_55] : memref<2x8x128xf32, #tpu.memory_space<vmem>>, vector<2x1x128xf32>
    %134 = vector.shape_cast %133 : vector<2x1x128xf32> to vector<2x128xf32>
    %135 = vector.shape_cast %131 : vector<2x128xf32> to vector<2x1x128xf32>
    tpu.vector_store %arg6[%c0_54, %132, %c0_55], %135 {strides = array<i32>} : memref<2x8x128xf32, #tpu.memory_space<vmem>>, vector<2x1x128xf32>,
    %c0_56 = arith.constant 0 : index
    %136 = arith.index_cast %c2_i32 : i32 to index
    %c0_57 = arith.constant 0 : index
    %137 = vector.load %arg7[%c0_56, %136, %c0_57] : memref<2x8x128xf32, #tpu.memory_space<vmem>>, vector<2x1x128xf32>
    %138 = vector.shape_cast %137 : vector<2x1x128xf32> to vector<2x128xf32>
    %139 = vector.shape_cast %129 : vector<2x128xf32> to vector<2x1x128xf32>
    tpu.vector_store %arg7[%c0_56, %136, %c0_57], %139 {strides = array<i32>} : memref<2x8x128xf32, #tpu.memory_space<vmem>>, vector<2x1x128xf32>,
    %c3_i32 = arith.constant 3 : i32
    %c0_58 = arith.constant 0 : index
    %140 = arith.index_cast %c3_i32 : i32 to index
    %c0_59 = arith.constant 0 : index
    %141 = vector.load %arg2[%c0_58, %140, %c0_59] : memref<2x8x512xf32, #tpu.memory_space<vmem>>, vector<2x1x512xf32>
    %142 = vector.shape_cast %141 : vector<2x1x512xf32> to vector<2x512xf32>
    %c0_60 = arith.constant 0 : index
    %c0_61 = arith.constant 0 : index
    %143 = vector.load %arg5[%c0_60, %c0_61] : memref<128x512xf32, #tpu.memory_space<vmem>>, vector<128x512xf32>
    %cst_62 = arith.constant dense<0.000000e+00> : vector<2x512xf32>
    %144 = tpu.matmul %131, %143, %cst_62 {dimension_numbers = #tpu.dot_dimension_numbers<[1], [0], [0], [1], [0, 0, 1, 1], [], []>} : vector<2x128xf32>, vector<128x512xf32>, vector<2x512xf32> -> vector<2x512xf32>
    %145 = arith.addf %142, %144 : vector<2x512xf32>
    %146 = vector.extract_strided_slice %145 {offsets = [0, 0], sizes = [2, 128], strides = [1, 1]} : vector<2x512xf32> to vector<2x128xf32>
    %cst_63 = arith.constant 5.000000e-01 : f32
    %147 = vector.broadcast %cst_63 : f32 to vector<2x128xf32>
    %148 = arith.mulf %147, %146 : vector<2x128xf32>
    %149 = math.tanh %148 : vector<2x128xf32>
    %cst_64 = arith.constant 5.000000e-01 : f32
    %150 = vector.broadcast %cst_64 : f32 to vector<2x128xf32>
    %151 = arith.mulf %150, %149 : vector<2x128xf32>
    %cst_65 = arith.constant 5.000000e-01 : f32
    %152 = vector.broadcast %cst_65 : f32 to vector<2x128xf32>
    %153 = arith.addf %151, %152 : vector<2x128xf32>
    %154 = vector.extract_strided_slice %145 {offsets = [0, 128], sizes = [2, 128], strides = [1, 1]} : vector<2x512xf32> to vector<2x128xf32>
    %cst_66 = arith.constant 5.000000e-01 : f32
    %155 = vector.broadcast %cst_66 : f32 to vector<2x128xf32>
    %156 = arith.mulf %155, %154 : vector<2x128xf32>
    %157 = math.tanh %156 : vector<2x128xf32>
    %cst_67 = arith.constant 5.000000e-01 : f32
    %158 = vector.broadcast %cst_67 : f32 to vector<2x128xf32>
    %159 = arith.mulf %158, %157 : vector<2x128xf32>
    %cst_68 = arith.constant 5.000000e-01 : f32
    %160 = vector.broadcast %cst_68 : f32 to vector<2x128xf32>
    %161 = arith.addf %159, %160 : vector<2x128xf32>
    %162 = vector.extract_strided_slice %145 {offsets = [0, 256], sizes = [2, 128], strides = [1, 1]} : vector<2x512xf32> to vector<2x128xf32>
    %cst_69 = arith.constant 5.000000e-01 : f32
    %163 = vector.broadcast %cst_69 : f32 to vector<2x128xf32>
    %164 = arith.mulf %163, %162 : vector<2x128xf32>
    %165 = math.tanh %164 : vector<2x128xf32>
    %cst_70 = arith.constant 5.000000e-01 : f32
    %166 = vector.broadcast %cst_70 : f32 to vector<2x128xf32>
    %167 = arith.mulf %166, %165 : vector<2x128xf32>
    %cst_71 = arith.constant 5.000000e-01 : f32
    %168 = vector.broadcast %cst_71 : f32 to vector<2x128xf32>
    %169 = arith.addf %167, %168 : vector<2x128xf32>
    %170 = vector.extract_strided_slice %145 {offsets = [0, 384], sizes = [2, 128], strides = [1, 1]} : vector<2x512xf32> to vector<2x128xf32>
    %171 = math.tanh %170 : vector<2x128xf32>
    %172 = arith.mulf %153, %129 : vector<2x128xf32>
    %173 = arith.mulf %161, %171 : vector<2x128xf32>
    %174 = arith.addf %172, %173 : vector<2x128xf32>
    %175 = math.tanh %174 : vector<2x128xf32>
    %176 = arith.mulf %175, %169 : vector<2x128xf32>
    %c0_72 = arith.constant 0 : index
    %177 = arith.index_cast %c3_i32 : i32 to index
    %c0_73 = arith.constant 0 : index
    %178 = vector.load %arg6[%c0_72, %177, %c0_73] : memref<2x8x128xf32, #tpu.memory_space<vmem>>, vector<2x1x128xf32>
    %179 = vector.shape_cast %178 : vector<2x1x128xf32> to vector<2x128xf32>
    %180 = vector.shape_cast %176 : vector<2x128xf32> to vector<2x1x128xf32>
    tpu.vector_store %arg6[%c0_72, %177, %c0_73], %180 {strides = array<i32>} : memref<2x8x128xf32, #tpu.memory_space<vmem>>, vector<2x1x128xf32>,
    %c0_74 = arith.constant 0 : index
    %181 = arith.index_cast %c3_i32 : i32 to index
    %c0_75 = arith.constant 0 : index
    %182 = vector.load %arg7[%c0_74, %181, %c0_75] : memref<2x8x128xf32, #tpu.memory_space<vmem>>, vector<2x1x128xf32>
    %183 = vector.shape_cast %182 : vector<2x1x128xf32> to vector<2x128xf32>
    %184 = vector.shape_cast %174 : vector<2x128xf32> to vector<2x1x128xf32>
    tpu.vector_store %arg7[%c0_74, %181, %c0_75], %184 {strides = array<i32>} : memref<2x8x128xf32, #tpu.memory_space<vmem>>, vector<2x1x128xf32>,
    %c4_i32 = arith.constant 4 : i32
    %c0_76 = arith.constant 0 : index
    %185 = arith.index_cast %c4_i32 : i32 to index
    %c0_77 = arith.constant 0 : index
    %186 = vector.load %arg2[%c0_76, %185, %c0_77] : memref<2x8x512xf32, #tpu.memory_space<vmem>>, vector<2x1x512xf32>
    %187 = vector.shape_cast %186 : vector<2x1x512xf32> to vector<2x512xf32>
    %c0_78 = arith.constant 0 : index
    %c0_79 = arith.constant 0 : index
    %188 = vector.load %arg5[%c0_78, %c0_79] : memref<128x512xf32, #tpu.memory_space<vmem>>, vector<128x512xf32>
    %cst_80 = arith.constant dense<0.000000e+00> : vector<2x512xf32>
    %189 = tpu.matmul %176, %188, %cst_80 {dimension_numbers = #tpu.dot_dimension_numbers<[1], [0], [0], [1], [0, 0, 1, 1], [], []>} : vector<2x128xf32>, vector<128x512xf32>, vector<2x512xf32> -> vector<2x512xf32>
    %190 = arith.addf %187, %189 : vector<2x512xf32>
    %191 = vector.extract_strided_slice %190 {offsets = [0, 0], sizes = [2, 128], strides = [1, 1]} : vector<2x512xf32> to vector<2x128xf32>
    %cst_81 = arith.constant 5.000000e-01 : f32
    %192 = vector.broadcast %cst_81 : f32 to vector<2x128xf32>
    %193 = arith.mulf %192, %191 : vector<2x128xf32>
    %194 = math.tanh %193 : vector<2x128xf32>
    %cst_82 = arith.constant 5.000000e-01 : f32
    %195 = vector.broadcast %cst_82 : f32 to vector<2x128xf32>
    %196 = arith.mulf %195, %194 : vector<2x128xf32>
    %cst_83 = arith.constant 5.000000e-01 : f32
    %197 = vector.broadcast %cst_83 : f32 to vector<2x128xf32>
    %198 = arith.addf %196, %197 : vector<2x128xf32>
    %199 = vector.extract_strided_slice %190 {offsets = [0, 128], sizes = [2, 128], strides = [1, 1]} : vector<2x512xf32> to vector<2x128xf32>
    %cst_84 = arith.constant 5.000000e-01 : f32
    %200 = vector.broadcast %cst_84 : f32 to vector<2x128xf32>
    %201 = arith.mulf %200, %199 : vector<2x128xf32>
    %202 = math.tanh %201 : vector<2x128xf32>
    %cst_85 = arith.constant 5.000000e-01 : f32
    %203 = vector.broadcast %cst_85 : f32 to vector<2x128xf32>
    %204 = arith.mulf %203, %202 : vector<2x128xf32>
    %cst_86 = arith.constant 5.000000e-01 : f32
    %205 = vector.broadcast %cst_86 : f32 to vector<2x128xf32>
    %206 = arith.addf %204, %205 : vector<2x128xf32>
    %207 = vector.extract_strided_slice %190 {offsets = [0, 256], sizes = [2, 128], strides = [1, 1]} : vector<2x512xf32> to vector<2x128xf32>
    %cst_87 = arith.constant 5.000000e-01 : f32
    %208 = vector.broadcast %cst_87 : f32 to vector<2x128xf32>
    %209 = arith.mulf %208, %207 : vector<2x128xf32>
    %210 = math.tanh %209 : vector<2x128xf32>
    %cst_88 = arith.constant 5.000000e-01 : f32
    %211 = vector.broadcast %cst_88 : f32 to vector<2x128xf32>
    %212 = arith.mulf %211, %210 : vector<2x128xf32>
    %cst_89 = arith.constant 5.000000e-01 : f32
    %213 = vector.broadcast %cst_89 : f32 to vector<2x128xf32>
    %214 = arith.addf %212, %213 : vector<2x128xf32>
    %215 = vector.extract_strided_slice %190 {offsets = [0, 384], sizes = [2, 128], strides = [1, 1]} : vector<2x512xf32> to vector<2x128xf32>
    %216 = math.tanh %215 : vector<2x128xf32>
    %217 = arith.mulf %198, %174 : vector<2x128xf32>
    %218 = arith.mulf %206, %216 : vector<2x128xf32>
    %219 = arith.addf %217, %218 : vector<2x128xf32>
    %220 = math.tanh %219 : vector<2x128xf32>
    %221 = arith.mulf %220, %214 : vector<2x128xf32>
    %c0_90 = arith.constant 0 : index
    %222 = arith.index_cast %c4_i32 : i32 to index
    %c0_91 = arith.constant 0 : index
    %223 = vector.load %arg6[%c0_90, %222, %c0_91] : memref<2x8x128xf32, #tpu.memory_space<vmem>>, vector<2x1x128xf32>
    %224 = vector.shape_cast %223 : vector<2x1x128xf32> to vector<2x128xf32>
    %225 = vector.shape_cast %221 : vector<2x128xf32> to vector<2x1x128xf32>
    tpu.vector_store %arg6[%c0_90, %222, %c0_91], %225 {strides = array<i32>} : memref<2x8x128xf32, #tpu.memory_space<vmem>>, vector<2x1x128xf32>,
    %c0_92 = arith.constant 0 : index
    %226 = arith.index_cast %c4_i32 : i32 to index
    %c0_93 = arith.constant 0 : index
    %227 = vector.load %arg7[%c0_92, %226, %c0_93] : memref<2x8x128xf32, #tpu.memory_space<vmem>>, vector<2x1x128xf32>
    %228 = vector.shape_cast %227 : vector<2x1x128xf32> to vector<2x128xf32>
    %229 = vector.shape_cast %219 : vector<2x128xf32> to vector<2x1x128xf32>
    tpu.vector_store %arg7[%c0_92, %226, %c0_93], %229 {strides = array<i32>} : memref<2x8x128xf32, #tpu.memory_space<vmem>>, vector<2x1x128xf32>,
    %c5_i32 = arith.constant 5 : i32
    %c0_94 = arith.constant 0 : index
    %230 = arith.index_cast %c5_i32 : i32 to index
    %c0_95 = arith.constant 0 : index
    %231 = vector.load %arg2[%c0_94, %230, %c0_95] : memref<2x8x512xf32, #tpu.memory_space<vmem>>, vector<2x1x512xf32>
    %232 = vector.shape_cast %231 : vector<2x1x512xf32> to vector<2x512xf32>
    %c0_96 = arith.constant 0 : index
    %c0_97 = arith.constant 0 : index
    %233 = vector.load %arg5[%c0_96, %c0_97] : memref<128x512xf32, #tpu.memory_space<vmem>>, vector<128x512xf32>
    %cst_98 = arith.constant dense<0.000000e+00> : vector<2x512xf32>
    %234 = tpu.matmul %221, %233, %cst_98 {dimension_numbers = #tpu.dot_dimension_numbers<[1], [0], [0], [1], [0, 0, 1, 1], [], []>} : vector<2x128xf32>, vector<128x512xf32>, vector<2x512xf32> -> vector<2x512xf32>
    %235 = arith.addf %232, %234 : vector<2x512xf32>
    %236 = vector.extract_strided_slice %235 {offsets = [0, 0], sizes = [2, 128], strides = [1, 1]} : vector<2x512xf32> to vector<2x128xf32>
    %cst_99 = arith.constant 5.000000e-01 : f32
    %237 = vector.broadcast %cst_99 : f32 to vector<2x128xf32>
    %238 = arith.mulf %237, %236 : vector<2x128xf32>
    %239 = math.tanh %238 : vector<2x128xf32>
    %cst_100 = arith.constant 5.000000e-01 : f32
    %240 = vector.broadcast %cst_100 : f32 to vector<2x128xf32>
    %241 = arith.mulf %240, %239 : vector<2x128xf32>
    %cst_101 = arith.constant 5.000000e-01 : f32
    %242 = vector.broadcast %cst_101 : f32 to vector<2x128xf32>
    %243 = arith.addf %241, %242 : vector<2x128xf32>
    %244 = vector.extract_strided_slice %235 {offsets = [0, 128], sizes = [2, 128], strides = [1, 1]} : vector<2x512xf32> to vector<2x128xf32>
    %cst_102 = arith.constant 5.000000e-01 : f32
    %245 = vector.broadcast %cst_102 : f32 to vector<2x128xf32>
    %246 = arith.mulf %245, %244 : vector<2x128xf32>
    %247 = math.tanh %246 : vector<2x128xf32>
    %cst_103 = arith.constant 5.000000e-01 : f32
    %248 = vector.broadcast %cst_103 : f32 to vector<2x128xf32>
    %249 = arith.mulf %248, %247 : vector<2x128xf32>
    %cst_104 = arith.constant 5.000000e-01 : f32
    %250 = vector.broadcast %cst_104 : f32 to vector<2x128xf32>
    %251 = arith.addf %249, %250 : vector<2x128xf32>
    %252 = vector.extract_strided_slice %235 {offsets = [0, 256], sizes = [2, 128], strides = [1, 1]} : vector<2x512xf32> to vector<2x128xf32>
    %cst_105 = arith.constant 5.000000e-01 : f32
    %253 = vector.broadcast %cst_105 : f32 to vector<2x128xf32>
    %254 = arith.mulf %253, %252 : vector<2x128xf32>
    %255 = math.tanh %254 : vector<2x128xf32>
    %cst_106 = arith.constant 5.000000e-01 : f32
    %256 = vector.broadcast %cst_106 : f32 to vector<2x128xf32>
    %257 = arith.mulf %256, %255 : vector<2x128xf32>
    %cst_107 = arith.constant 5.000000e-01 : f32
    %258 = vector.broadcast %cst_107 : f32 to vector<2x128xf32>
    %259 = arith.addf %257, %258 : vector<2x128xf32>
    %260 = vector.extract_strided_slice %235 {offsets = [0, 384], sizes = [2, 128], strides = [1, 1]} : vector<2x512xf32> to vector<2x128xf32>
    %261 = math.tanh %260 : vector<2x128xf32>
    %262 = arith.mulf %243, %219 : vector<2x128xf32>
    %263 = arith.mulf %251, %261 : vector<2x128xf32>
    %264 = arith.addf %262, %263 : vector<2x128xf32>
    %265 = math.tanh %264 : vector<2x128xf32>
    %266 = arith.mulf %265, %259 : vector<2x128xf32>
    %c0_108 = arith.constant 0 : index
    %267 = arith.index_cast %c5_i32 : i32 to index
    %c0_109 = arith.constant 0 : index
    %268 = vector.load %arg6[%c0_108, %267, %c0_109] : memref<2x8x128xf32, #tpu.memory_space<vmem>>, vector<2x1x128xf32>
    %269 = vector.shape_cast %268 : vector<2x1x128xf32> to vector<2x128xf32>
    %270 = vector.shape_cast %266 : vector<2x128xf32> to vector<2x1x128xf32>
    tpu.vector_store %arg6[%c0_108, %267, %c0_109], %270 {strides = array<i32>} : memref<2x8x128xf32, #tpu.memory_space<vmem>>, vector<2x1x128xf32>,
    %c0_110 = arith.constant 0 : index
    %271 = arith.index_cast %c5_i32 : i32 to index
    %c0_111 = arith.constant 0 : index
    %272 = vector.load %arg7[%c0_110, %271, %c0_111] : memref<2x8x128xf32, #tpu.memory_space<vmem>>, vector<2x1x128xf32>
    %273 = vector.shape_cast %272 : vector<2x1x128xf32> to vector<2x128xf32>
    %274 = vector.shape_cast %264 : vector<2x128xf32> to vector<2x1x128xf32>
    tpu.vector_store %arg7[%c0_110, %271, %c0_111], %274 {strides = array<i32>} : memref<2x8x128xf32, #tpu.memory_space<vmem>>, vector<2x1x128xf32>,
    %c6_i32 = arith.constant 6 : i32
    %c0_112 = arith.constant 0 : index
    %275 = arith.index_cast %c6_i32 : i32 to index
    %c0_113 = arith.constant 0 : index
    %276 = vector.load %arg2[%c0_112, %275, %c0_113] : memref<2x8x512xf32, #tpu.memory_space<vmem>>, vector<2x1x512xf32>
    %277 = vector.shape_cast %276 : vector<2x1x512xf32> to vector<2x512xf32>
    %c0_114 = arith.constant 0 : index
    %c0_115 = arith.constant 0 : index
    %278 = vector.load %arg5[%c0_114, %c0_115] : memref<128x512xf32, #tpu.memory_space<vmem>>, vector<128x512xf32>
    %cst_116 = arith.constant dense<0.000000e+00> : vector<2x512xf32>
    %279 = tpu.matmul %266, %278, %cst_116 {dimension_numbers = #tpu.dot_dimension_numbers<[1], [0], [0], [1], [0, 0, 1, 1], [], []>} : vector<2x128xf32>, vector<128x512xf32>, vector<2x512xf32> -> vector<2x512xf32>
    %280 = arith.addf %277, %279 : vector<2x512xf32>
    %281 = vector.extract_strided_slice %280 {offsets = [0, 0], sizes = [2, 128], strides = [1, 1]} : vector<2x512xf32> to vector<2x128xf32>
    %cst_117 = arith.constant 5.000000e-01 : f32
    %282 = vector.broadcast %cst_117 : f32 to vector<2x128xf32>
    %283 = arith.mulf %282, %281 : vector<2x128xf32>
    %284 = math.tanh %283 : vector<2x128xf32>
    %cst_118 = arith.constant 5.000000e-01 : f32
    %285 = vector.broadcast %cst_118 : f32 to vector<2x128xf32>
    %286 = arith.mulf %285, %284 : vector<2x128xf32>
    %cst_119 = arith.constant 5.000000e-01 : f32
    %287 = vector.broadcast %cst_119 : f32 to vector<2x128xf32>
    %288 = arith.addf %286, %287 : vector<2x128xf32>
    %289 = vector.extract_strided_slice %280 {offsets = [0, 128], sizes = [2, 128], strides = [1, 1]} : vector<2x512xf32> to vector<2x128xf32>
    %cst_120 = arith.constant 5.000000e-01 : f32
    %290 = vector.broadcast %cst_120 : f32 to vector<2x128xf32>
    %291 = arith.mulf %290, %289 : vector<2x128xf32>
    %292 = math.tanh %291 : vector<2x128xf32>
    %cst_121 = arith.constant 5.000000e-01 : f32
    %293 = vector.broadcast %cst_121 : f32 to vector<2x128xf32>
    %294 = arith.mulf %293, %292 : vector<2x128xf32>
    %cst_122 = arith.constant 5.000000e-01 : f32
    %295 = vector.broadcast %cst_122 : f32 to vector<2x128xf32>
    %296 = arith.addf %294, %295 : vector<2x128xf32>
    %297 = vector.extract_strided_slice %280 {offsets = [0, 256], sizes = [2, 128], strides = [1, 1]} : vector<2x512xf32> to vector<2x128xf32>
    %cst_123 = arith.constant 5.000000e-01 : f32
    %298 = vector.broadcast %cst_123 : f32 to vector<2x128xf32>
    %299 = arith.mulf %298, %297 : vector<2x128xf32>
    %300 = math.tanh %299 : vector<2x128xf32>
    %cst_124 = arith.constant 5.000000e-01 : f32
    %301 = vector.broadcast %cst_124 : f32 to vector<2x128xf32>
    %302 = arith.mulf %301, %300 : vector<2x128xf32>
    %cst_125 = arith.constant 5.000000e-01 : f32
    %303 = vector.broadcast %cst_125 : f32 to vector<2x128xf32>
    %304 = arith.addf %302, %303 : vector<2x128xf32>
    %305 = vector.extract_strided_slice %280 {offsets = [0, 384], sizes = [2, 128], strides = [1, 1]} : vector<2x512xf32> to vector<2x128xf32>
    %306 = math.tanh %305 : vector<2x128xf32>
    %307 = arith.mulf %288, %264 : vector<2x128xf32>
    %308 = arith.mulf %296, %306 : vector<2x128xf32>
    %309 = arith.addf %307, %308 : vector<2x128xf32>
    %310 = math.tanh %309 : vector<2x128xf32>
    %311 = arith.mulf %310, %304 : vector<2x128xf32>
    %c0_126 = arith.constant 0 : index
    %312 = arith.index_cast %c6_i32 : i32 to index
    %c0_127 = arith.constant 0 : index
    %313 = vector.load %arg6[%c0_126, %312, %c0_127] : memref<2x8x128xf32, #tpu.memory_space<vmem>>, vector<2x1x128xf32>
    %314 = vector.shape_cast %313 : vector<2x1x128xf32> to vector<2x128xf32>
    %315 = vector.shape_cast %311 : vector<2x128xf32> to vector<2x1x128xf32>
    tpu.vector_store %arg6[%c0_126, %312, %c0_127], %315 {strides = array<i32>} : memref<2x8x128xf32, #tpu.memory_space<vmem>>, vector<2x1x128xf32>,
    %c0_128 = arith.constant 0 : index
    %316 = arith.index_cast %c6_i32 : i32 to index
    %c0_129 = arith.constant 0 : index
    %317 = vector.load %arg7[%c0_128, %316, %c0_129] : memref<2x8x128xf32, #tpu.memory_space<vmem>>, vector<2x1x128xf32>
    %318 = vector.shape_cast %317 : vector<2x1x128xf32> to vector<2x128xf32>
    %319 = vector.shape_cast %309 : vector<2x128xf32> to vector<2x1x128xf32>
    tpu.vector_store %arg7[%c0_128, %316, %c0_129], %319 {strides = array<i32>} : memref<2x8x128xf32, #tpu.memory_space<vmem>>, vector<2x1x128xf32>,
    %c7_i32 = arith.constant 7 : i32
    %c0_130 = arith.constant 0 : index
    %320 = arith.index_cast %c7_i32 : i32 to index
    %c0_131 = arith.constant 0 : index
    %321 = vector.load %arg2[%c0_130, %320, %c0_131] : memref<2x8x512xf32, #tpu.memory_space<vmem>>, vector<2x1x512xf32>
    %322 = vector.shape_cast %321 : vector<2x1x512xf32> to vector<2x512xf32>
    %c0_132 = arith.constant 0 : index
    %c0_133 = arith.constant 0 : index
    %323 = vector.load %arg5[%c0_132, %c0_133] : memref<128x512xf32, #tpu.memory_space<vmem>>, vector<128x512xf32>
    %cst_134 = arith.constant dense<0.000000e+00> : vector<2x512xf32>
    %324 = tpu.matmul %311, %323, %cst_134 {dimension_numbers = #tpu.dot_dimension_numbers<[1], [0], [0], [1], [0, 0, 1, 1], [], []>} : vector<2x128xf32>, vector<128x512xf32>, vector<2x512xf32> -> vector<2x512xf32>
    %325 = arith.addf %322, %324 : vector<2x512xf32>
    %326 = vector.extract_strided_slice %325 {offsets = [0, 0], sizes = [2, 128], strides = [1, 1]} : vector<2x512xf32> to vector<2x128xf32>
    %cst_135 = arith.constant 5.000000e-01 : f32
    %327 = vector.broadcast %cst_135 : f32 to vector<2x128xf32>
    %328 = arith.mulf %327, %326 : vector<2x128xf32>
    %329 = math.tanh %328 : vector<2x128xf32>
    %cst_136 = arith.constant 5.000000e-01 : f32
    %330 = vector.broadcast %cst_136 : f32 to vector<2x128xf32>
    %331 = arith.mulf %330, %329 : vector<2x128xf32>
    %cst_137 = arith.constant 5.000000e-01 : f32
    %332 = vector.broadcast %cst_137 : f32 to vector<2x128xf32>
    %333 = arith.addf %331, %332 : vector<2x128xf32>
    %334 = vector.extract_strided_slice %325 {offsets = [0, 128], sizes = [2, 128], strides = [1, 1]} : vector<2x512xf32> to vector<2x128xf32>
    %cst_138 = arith.constant 5.000000e-01 : f32
    %335 = vector.broadcast %cst_138 : f32 to vector<2x128xf32>
    %336 = arith.mulf %335, %334 : vector<2x128xf32>
    %337 = math.tanh %336 : vector<2x128xf32>
    %cst_139 = arith.constant 5.000000e-01 : f32
    %338 = vector.broadcast %cst_139 : f32 to vector<2x128xf32>
    %339 = arith.mulf %338, %337 : vector<2x128xf32>
    %cst_140 = arith.constant 5.000000e-01 : f32
    %340 = vector.broadcast %cst_140 : f32 to vector<2x128xf32>
    %341 = arith.addf %339, %340 : vector<2x128xf32>
    %342 = vector.extract_strided_slice %325 {offsets = [0, 256], sizes = [2, 128], strides = [1, 1]} : vector<2x512xf32> to vector<2x128xf32>
    %cst_141 = arith.constant 5.000000e-01 : f32
    %343 = vector.broadcast %cst_141 : f32 to vector<2x128xf32>
    %344 = arith.mulf %343, %342 : vector<2x128xf32>
    %345 = math.tanh %344 : vector<2x128xf32>
    %cst_142 = arith.constant 5.000000e-01 : f32
    %346 = vector.broadcast %cst_142 : f32 to vector<2x128xf32>
    %347 = arith.mulf %346, %345 : vector<2x128xf32>
    %cst_143 = arith.constant 5.000000e-01 : f32
    %348 = vector.broadcast %cst_143 : f32 to vector<2x128xf32>
    %349 = arith.addf %347, %348 : vector<2x128xf32>
    %350 = vector.extract_strided_slice %325 {offsets = [0, 384], sizes = [2, 128], strides = [1, 1]} : vector<2x512xf32> to vector<2x128xf32>
    %351 = math.tanh %350 : vector<2x128xf32>
    %352 = arith.mulf %333, %309 : vector<2x128xf32>
    %353 = arith.mulf %341, %351 : vector<2x128xf32>
    %354 = arith.addf %352, %353 : vector<2x128xf32>
    %355 = math.tanh %354 : vector<2x128xf32>
    %356 = arith.mulf %355, %349 : vector<2x128xf32>
    %c0_144 = arith.constant 0 : index
    %357 = arith.index_cast %c7_i32 : i32 to index
    %c0_145 = arith.constant 0 : index
    %358 = vector.load %arg6[%c0_144, %357, %c0_145] : memref<2x8x128xf32, #tpu.memory_space<vmem>>, vector<2x1x128xf32>
    %359 = vector.shape_cast %358 : vector<2x1x128xf32> to vector<2x128xf32>
    %360 = vector.shape_cast %356 : vector<2x128xf32> to vector<2x1x128xf32>
    tpu.vector_store %arg6[%c0_144, %357, %c0_145], %360 {strides = array<i32>} : memref<2x8x128xf32, #tpu.memory_space<vmem>>, vector<2x1x128xf32>,
    %c0_146 = arith.constant 0 : index
    %361 = arith.index_cast %c7_i32 : i32 to index
    %c0_147 = arith.constant 0 : index
    %362 = vector.load %arg7[%c0_146, %361, %c0_147] : memref<2x8x128xf32, #tpu.memory_space<vmem>>, vector<2x1x128xf32>
    %363 = vector.shape_cast %362 : vector<2x1x128xf32> to vector<2x128xf32>
    %364 = vector.shape_cast %354 : vector<2x128xf32> to vector<2x1x128xf32>
    tpu.vector_store %arg7[%c0_146, %361, %c0_147], %364 {strides = array<i32>} : memref<2x8x128xf32, #tpu.memory_space<vmem>>, vector<2x1x128xf32>,
    %c8_i32 = arith.constant 8 : i32
    %c0_148 = arith.constant 0 : index
    %c0_149 = arith.constant 0 : index
    %365 = vector.load %arg8[%c0_148, %c0_149] : memref<2x128xf32, #tpu.memory_space<vmem>>, vector<2x128xf32>
    tpu.vector_store %arg8[%c0_148, %c0_149], %356 {strides = array<i32>} : memref<2x128xf32, #tpu.memory_space<vmem>>, vector<2x128xf32>,
    %c0_150 = arith.constant 0 : index
    %c0_151 = arith.constant 0 : index
    %366 = vector.load %arg9[%c0_150, %c0_151] : memref<2x128xf32, #tpu.memory_space<vmem>>, vector<2x128xf32>
    tpu.vector_store %arg9[%c0_150, %c0_151], %354 {strides = array<i32>} : memref<2x128xf32, #tpu.memory_space<vmem>>, vector<2x128xf32>,
    return
  }
  func.func @transform_0(%arg0: i32, %arg1: i32) -> (i32, i32, i32) {
    %c0_i32 = arith.constant 0 : i32
    %c0_i32_0 = arith.constant 0 : i32
    return %arg0, %arg1, %c0_i32 : i32, i32, i32
  }
  func.func @transform_1(%arg0: i32, %arg1: i32) -> (i32, i32) {
    %c0_i32 = arith.constant 0 : i32
    %c0_i32_0 = arith.constant 0 : i32
    return %arg0, %c0_i32 : i32, i32
  }
  func.func @transform_2(%arg0: i32, %arg1: i32) -> (i32, i32) {
    %c0_i32 = arith.constant 0 : i32
    %c0_i32_0 = arith.constant 0 : i32
    return %arg0, %c0_i32 : i32, i32
  }
  func.func @transform_3(%arg0: i32, %arg1: i32) -> (i32, i32) {
    %c0_i32 = arith.constant 0 : i32
    %c0_i32_0 = arith.constant 0 : i32
    %c0_i32_1 = arith.constant 0 : i32
    return %c0_i32, %c0_i32_0 : i32, i32
  }
  func.func @transform_4(%arg0: i32, %arg1: i32) -> (i32, i32, i32) {
    %c0_i32 = arith.constant 0 : i32
    %c0_i32_0 = arith.constant 0 : i32
    return %arg0, %arg1, %c0_i32 : i32, i32, i32
  }
  func.func @transform_5(%arg0: i32, %arg1: i32) -> (i32, i32, i32) {
    %c0_i32 = arith.constant 0 : i32
    %c0_i32_0 = arith.constant 0 : i32
    return %arg0, %arg1, %c0_i32 : i32, i32, i32
  }
}

</mosaic_0001>

<bundles_post_ra>
// kernel: lstm_cell_forward.2
= control target key start
LH: loop header
LB: loop body
LE: loop exit
PB: predicated region body
PF: predicated region fallthrough
CT: control target
= control target key end

     0   :  { %vm51_vm0 = vcmask 1043456   ;;  %v237_v2 = vmov 0.0   ;;  %vm44_vm1 = vcmask 31744   ;;  %v20_v7 = vlaneseq  ;;  %s297_s1 = inlined_call_operand.vmem [shape: f32[4,512], index: 1, kind: input, shape index: {}]   ;;  %s298_s0 = inlined_call_operand.vmem [shape: f32[16,4], index: 0, kind: input, shape index: {}]   ;;  %s299_s2 = inlined_call_operand.vmem [shape: f32[1,512], index: 2, kind: input, shape index: {}]   ;;  %s300_s3 = inlined_call_operand.vmem [shape: f32[16,512], index: 3, kind: output, shape index: {}]  }
   0x1   :  { %v16_v0 = vld [vmem:[%s297_s1] sm:$0xff]  ;;  %v17_v1 = vld [vmem:[%s297_s1 + $0x8] sm:$0xff]  ;;  %124 = vmatprep.mubr.f32.mxu0 %v237_v2  ;;  %201 = vmatprep.mubr.f32.mxu1 %v237_v2 }
   0x2   :  { %v42_v3 = vcombine.high %v16_v0, %v16_v0  ;;  %v43_v4 = vcombine.high %v17_v1, %v17_v1  ;;  %v14_v5 = vld [vmem:[%s298_s0] sm:$0xff]  ;;  %v15_v6 = vld [vmem:[%s298_s0 + $0x8] sm:$0xff]  ;;  %v21_v8 = vshrl.u32 %v20_v7, 7 }
   0x3   :  { %v18_v11 = vld [vmem:[%s299_s2] sm:$0xf] }
   0x4   :  { %226 = vmatprep.subr.msk.mxu0 %vm51_vm0, %v42_v3  ;;  %230 = vmatprep.subr.msk.mxu1 %vm51_vm0, %v43_v4  ;;  %v22_v9 = vsub.s32 0, %v21_v8  ;;  %v30_v10 = vsub.s32 2, %v21_v8  ;;  %v26_v12 = vsub.s32 1, %v21_v8  ;;  %v34_v13 = vsub.s32 3, %v21_v8 }
   0x5   :  { %227 = vmatpush1.msk.msra.mxu0 %vm51_vm0, %v16_v0  ;;  %231 = vmatpush1.msk.msra.mxu1 %vm51_vm0, %v17_v1 }
   0x6   :  { %228 = vmatmul.mubr.msk.f32.vlgmr.msra.gmra.mrb[0].mxu0 %vm44_vm1, %v14_v5  ;;  %232 = vmatmul.mubr.msk.f32.vlgmr.msra.gmra.mrb[0].mxu1 %vm44_vm1, %v14_v5  ;;  %v23_v14 = vrot.slane %v18_v11, %v22_v9  ;;  %v31_v15 = vrot.slane %v18_v11, %v30_v10  ;;  %v27_v16 = vrot.slane %v18_v11, %v26_v12 }
   0x7   :  { %130 = vmatprep.mubr.f32.mxu0 %v237_v2  ;;  %207 = vmatprep.mubr.f32.mxu1 %v237_v2  ;;  %v35_v17 = vrot.slane %v18_v11, %v34_v13 }
   0xa   :  { %229 = vmatmul.mubr.msk.f32.gmra.mrb[2].mxu0 %vm44_vm1, %v15_v6  ;;  %233 = vmatmul.mubr.msk.f32.gmra.mrb[2].mxu1 %vm44_vm1, %v15_v6 }
  0xd9   :  { %v126_v18 = vpop.f32.mrb[0].mxu0  ;;  %v203_v19 = vpop.f32.mrb[0].mxu1 }
  0xda   :  { %v127_v20 = vadd.f32 %v126_v18, %v23_v14  ;;  %v204_v21 = vadd.f32 %v203_v19, %v31_v15  ;;  %v128_v22 = vpop.f32.mrb[1].mxu0  ;;  %v205_v23 = vpop.f32.mrb[1].mxu1 }
  0xdb   :  { %v129_v24 = vadd.f32 %v128_v22, %v27_v16  ;;  %v206_v25 = vadd.f32 %v205_v23, %v35_v17 }
  0xdc   :  { %214 = vst [vmem:[%s300_s3] sm:$0xff] %v127_v20  ;;  %216 = vst [vmem:[%s300_s3 + $0x10] sm:$0xff] %v204_v21 }
  0xdd   :  { %215 = vst [vmem:[%s300_s3 + $0x8] sm:$0xff] %v129_v24  ;;  %217 = vst [vmem:[%s300_s3 + $0x18] sm:$0xff] %v206_v25  ;;  %v132_v26 = vpop.f32.mrb[2].mxu0  ;;  %v209_v27 = vpop.f32.mrb[2].mxu1 }
  0xde   :  { %v133_v28 = vadd.f32 %v132_v26, %v23_v14  ;;  %v210_v29 = vadd.f32 %v209_v27, %v31_v15  ;;  %v134_v30 = vpop.f32.mrb[3].mxu0  ;;  %v211_v31 = vpop.f32.mrb[3].mxu1 }
  0xdf   :  { %v135_v32 = vadd.f32 %v134_v30, %v27_v16  ;;  %v212_v33 = vadd.f32 %v211_v31, %v35_v17 }
  0xe0   :  { %218 = vst [vmem:[%s300_s3 + $0x20] sm:$0xff] %v133_v28  ;;  %220 = vst [vmem:[%s300_s3 + $0x30] sm:$0xff] %v210_v29 }
  0xe1   :  { %219 = vst [vmem:[%s300_s3 + $0x28] sm:$0xff] %v135_v32  ;;  %221 = vst [vmem:[%s300_s3 + $0x38] sm:$0xff] %v212_v33 }

// kernel: lstm_cell_forward.3
= control target key start
LH: loop header
LB: loop body
LE: loop exit
PB: predicated region body
PF: predicated region fallthrough
CT: control target
= control target key end

     0   :  { %11 = vsyncpa [#allocation5], 0  ;;  %v3427_v7 = vmov 0.0   ;;  %s4709_s0 = inlined_call_operand.vmem [shape: f32[2,8,512], index: 0, kind: input, shape index: {}]   ;;  %s4710_s1 = inlined_call_operand.vmem [shape: f32[2,128], index: 1, kind: input, shape index: {}]   ;;  %s4711_s2 = inlined_call_operand.vmem [shape: f32[2,128], index: 2, kind: input, shape index: {}]   ;;  %s4712_s3 = inlined_call_operand.vmem [shape: f32[128,512], index: 3, kind: input, shape index: {}]   ;;  %s4713_s4 = inlined_call_operand.hbm [shape: f32[2,8,128], index: 4, kind: output, shape index: {0}]   ;;  %s4714_s5 = inlined_call_operand.hbm [shape: f32[2,8,128], index: 5, kind: output, shape index: {1}]  }
   0x1   :  { %v35_v0 = vld [vmem:[%s4712_s3 + $0x8] sm:$0xff]  ;;  %v37_v2 = vld [vmem:[%s4712_s3 + $0x18] sm:$0xff]  ;;  %v34_v5 = vld [vmem:[%s4712_s3] sm:$0xff]  ;;  %162 = vmatprep.mubr.f32.mxu0 %v3427_v7  ;;  %233 = vmatprep.mubr.f32.mxu1 %v3427_v7 }
   0x2   :  { %v39_v1 = vld [vmem:[%s4712_s3 + $0x28] sm:$0xff]  ;;  %v41_v4 = vld [vmem:[%s4712_s3 + $0x38] sm:$0xff]  ;;  %v38_v6 = vld [vmem:[%s4712_s3 + $0x20] sm:$0xff] }
   0x3   :  { %v3472_v3 = vpack.c.bf16 %v39_v1, %v35_v0  ;;  %v3485_v8 = vpack.c.bf16 %v41_v4, %v37_v2  ;;  %v3487_v9 = vpack.c.bf16 %v38_v6, %v34_v5  ;;  %v36_v10 = vld [vmem:[%s4712_s3 + $0x10] sm:$0xff]  ;;  %v43_v12 = vld [vmem:[%s4712_s3 + $0x48] sm:$0xff]  ;;  %v45_v15 = vld [vmem:[%s4712_s3 + $0x58] sm:$0xff] }
   0x4   :  { %v40_v11 = vld [vmem:[%s4712_s3 + $0x30] sm:$0xff]  ;;  %v47_v14 = vld [vmem:[%s4712_s3 + $0x68] sm:$0xff]  ;;  %v49_v16 = vld [vmem:[%s4712_s3 + $0x78] sm:$0xff] }
   0x5   :  { %2702 = vmatprep.subr.bf16.mxu0 %v3472_v3  ;;  %v3499_v13 = vpack.c.bf16 %v40_v11, %v36_v10  ;;  %2734 = vmatprep.subr.bf16.mxu1 %v3485_v8  ;;  %v3512_v17 = vpack.c.bf16 %v47_v14, %v43_v12  ;;  %v3514_v18 = vpack.c.bf16 %v49_v16, %v45_v15  ;;  %v42_v19 = vld [vmem:[%s4712_s3 + $0x40] sm:$0xff]  ;;  %v44_v21 = vld [vmem:[%s4712_s3 + $0x50] sm:$0xff]  ;;  %v51_v24 = vld [vmem:[%s4712_s3 + $0x88] sm:$0xff] }
   0x6   :  { %2704 = vmatpush1.bf16.msra.mxu0 %v3487_v9  ;;  %v46_v20 = vld [vmem:[%s4712_s3 + $0x60] sm:$0xff]  ;;  %v48_v23 = vld [vmem:[%s4712_s3 + $0x70] sm:$0xff]  ;;  %v55_v25 = vld [vmem:[%s4712_s3 + $0xa8] sm:$0xff] }
   0x7   :  { %2736 = vmatpush1.bf16.msra.mxu1 %v3499_v13  ;;  %v3526_v22 = vpack.c.bf16 %v46_v20, %v42_v19  ;;  %2706 = vmatprep.subr.bf16.mxu0 %v3512_v17  ;;  %v3539_v26 = vpack.c.bf16 %v48_v23, %v44_v21  ;;  %v3541_v27 = vpack.c.bf16 %v55_v25, %v51_v24  ;;  %v53_v28 = vld [vmem:[%s4712_s3 + $0x98] sm:$0xff]  ;;  %v50_v30 = vld [vmem:[%s4712_s3 + $0x80] sm:$0xff]  ;;  %v52_v33 = vld [vmem:[%s4712_s3 + $0x90] sm:$0xff] }
   0x8   :  { %2738 = vmatprep.subr.bf16.mxu1 %v3514_v18  ;;  %v57_v29 = vld [vmem:[%s4712_s3 + $0xb8] sm:$0xff]  ;;  %v54_v32 = vld [vmem:[%s4712_s3 + $0xa0] sm:$0xff]  ;;  %v56_v34 = vld [vmem:[%s4712_s3 + $0xb0] sm:$0xff] }
   0x9   :  { %v3552_v31 = vpack.c.bf16 %v57_v29, %v53_v28  ;;  %v3564_v35 = vpack.c.bf16 %v54_v32, %v50_v30  ;;  %v59_v36 = vld [vmem:[%s4712_s3 + $0xc8] sm:$0xff]  ;;  %v61_v38 = vld [vmem:[%s4712_s3 + $0xd8] sm:$0xff]  ;;  %v3577_v39 = vpack.c.bf16 %v56_v34, %v52_v33  ;;  %v58_v42 = vld [vmem:[%s4712_s3 + $0xc0] sm:$0xff] }
   0xa   :  { %2708 = vmatpush1.bf16.msra.mxu0 %v3526_v22  ;;  %v63_v37 = vld [vmem:[%s4712_s3 + $0xe8] sm:$0xff]  ;;  %v65_v41 = vld [vmem:[%s4712_s3 + $0xf8] sm:$0xff]  ;;  %v62_v43 = vld [vmem:[%s4712_s3 + $0xe0] sm:$0xff] }
   0xb   :  { %2740 = vmatpush1.bf16.msra.mxu1 %v3539_v26  ;;  %2710 = vmatprep.subr.bf16.mxu0 %v3541_v27  ;;  %v3579_v40 = vpack.c.bf16 %v63_v37, %v59_v36  ;;  %v3591_v44 = vpack.c.bf16 %v65_v41, %v61_v38  ;;  %v60_v45 = vld [vmem:[%s4712_s3 + $0xd0] sm:$0xff]  ;;  %v67_v47 = vld [vmem:[%s4712_s3 + $0x108] sm:$0xff]  ;;  %v69_v49 = vld [vmem:[%s4712_s3 + $0x118] sm:$0xff]  ;;  %v3612_v51 = vpack.c.bf16 %v62_v43, %v58_v42 }
   0xc   :  { %2742 = vmatprep.subr.bf16.mxu1 %v3552_v31  ;;  %v64_v46 = vld [vmem:[%s4712_s3 + $0xf0] sm:$0xff]  ;;  %v71_v48 = vld [vmem:[%s4712_s3 + $0x128] sm:$0xff]  ;;  %v73_v50 = vld [vmem:[%s4712_s3 + $0x138] sm:$0xff] }
   0xd   :  { %v3616_v52 = vpack.c.bf16 %v64_v46, %v60_v45  ;;  %v3618_v53 = vpack.c.bf16 %v71_v48, %v67_v47  ;;  %v66_v54 = vld [vmem:[%s4712_s3 + $0x100] sm:$0xff]  ;;  %v68_v56 = vld [vmem:[%s4712_s3 + $0x110] sm:$0xff]  ;;  %v3630_v57 = vpack.c.bf16 %v73_v50, %v69_v49  ;;  %v75_v59 = vld [vmem:[%s4712_s3 + $0x148] sm:$0xff] }
   0xe   :  { %2712 = vmatpush1.bf16.msra.mxu0 %v3564_v35  ;;  %v70_v55 = vld [vmem:[%s4712_s3 + $0x120] sm:$0xff]  ;;  %v72_v58 = vld [vmem:[%s4712_s3 + $0x130] sm:$0xff]  ;;  %v79_v60 = vld [vmem:[%s4712_s3 + $0x168] sm:$0xff] }
   0xf   :  { %2744 = vmatpush1.bf16.msra.mxu1 %v3577_v39  ;;  %2714 = vmatprep.subr.bf16.mxu0 %v3579_v40  ;;  %v77_v61 = vld [vmem:[%s4712_s3 + $0x158] sm:$0xff]  ;;  %v3648_v63 = vpack.c.bf16 %v70_v55, %v66_v54  ;;  %v3652_v0 = vpack.c.bf16 %v72_v58, %v68_v56  ;;  %v3654_v1 = vpack.c.bf16 %v79_v60, %v75_v59  ;;  %v74_v2 = vld [vmem:[%s4712_s3 + $0x140] sm:$0xff]  ;;  %v76_v5 = vld [vmem:[%s4712_s3 + $0x150] sm:$0xff] }
  0x10   :  { %2746 = vmatprep.subr.bf16.mxu1 %v3591_v44  ;;  %v81_v62 = vld [vmem:[%s4712_s3 + $0x178] sm:$0xff]  ;;  %v78_v4 = vld [vmem:[%s4712_s3 + $0x160] sm:$0xff]  ;;  %v80_v10 = vld [vmem:[%s4712_s3 + $0x170] sm:$0xff] }
  0x11   :  { %v3666_v6 = vpack.c.bf16 %v81_v62, %v77_v61  ;;  %v83_v11 = vld [vmem:[%s4712_s3 + $0x188] sm:$0xff]  ;;  %v85_v14 = vld [vmem:[%s4712_s3 + $0x198] sm:$0xff]  ;;  %v3684_v16 = vpack.c.bf16 %v78_v4, %v74_v2  ;;  %v82_v19 = vld [vmem:[%s4712_s3 + $0x180] sm:$0xff]  ;;  %v3694_v21 = vpack.c.bf16 %v80_v10, %v76_v5 }
  0x12   :  { %2716 = vmatpush1.bf16.msra.mxu0 %v3612_v51  ;;  %v87_v12 = vld [vmem:[%s4712_s3 + $0x1a8] sm:$0xff]  ;;  %v89_v15 = vld [vmem:[%s4712_s3 + $0x1b8] sm:$0xff]  ;;  %v86_v20 = vld [vmem:[%s4712_s3 + $0x1a0] sm:$0xff] }
  0x13   :  { %2748 = vmatpush1.bf16.msra.mxu1 %v3616_v52  ;;  %2718 = vmatprep.subr.bf16.mxu0 %v3618_v53  ;;  %v3696_v23 = vpack.c.bf16 %v87_v12, %v83_v11  ;;  %v84_v24 = vld [vmem:[%s4712_s3 + $0x190] sm:$0xff]  ;;  %v25_v25 = vld [vmem:[%s4710_s1] sm:$0x3] }
  0x14   :  { %2750 = vmatprep.subr.bf16.mxu1 %v3630_v57 }
  0x16   :  { %2720 = vmatpush1.bf16.msra.mxu0 %v3648_v63 }
  0x17   :  { %2752 = vmatpush1.bf16.msra.mxu1 %v3652_v0  ;;  %2722 = vmatprep.subr.bf16.mxu0 %v3654_v1 }
  0x18   :  { %12 = vsyncpa [#allocation7], 0  ;;  %2754 = vmatprep.subr.bf16.mxu1 %v3666_v6  ;;  %v3705_v28 = vpack.c.bf16 %v89_v15, %v85_v14  ;;  %v88_v29 = vld [vmem:[%s4712_s3 + $0x1b0] sm:$0xff]  ;;  %v91_v30 = vld [vmem:[%s4712_s3 + $0x1c8] sm:$0xff]  ;;  %26 = vst [vmem:[#allocation2] sm:$0x3] %v25_v25  ;;  %v3723_v36 = vpack.c.bf16 %v86_v20, %v82_v19  ;;  %v249_v56 = vlaneseq }
  0x19   :  { %v95_v32 = vld [vmem:[%s4712_s3 + $0x1e8] sm:$0xff]  ;;  %v93_v33 = vld [vmem:[%s4712_s3 + $0x1d8] sm:$0xff]  ;;  %v3727_v37 = vpack.c.bf16 %v88_v29, %v84_v24  ;;  %v90_v41 = vld [vmem:[%s4712_s3 + $0x1c0] sm:$0xff]  ;;  %v3428_v54 = vmov 1966171168  }
  0x1a   :  { %v97_v34 = vld [vmem:[%s4712_s3 + $0x1f8] sm:$0xff]  ;;  %2724 = vmatpush1.bf16.msra.mxu0 %v3684_v16  ;;  %v3729_v38 = vpack.c.bf16 %v95_v32, %v91_v30  ;;  %v94_v42 = vld [vmem:[%s4712_s3 + $0x1e0] sm:$0xff]  ;;  %v92_v45 = vld [vmem:[%s4712_s3 + $0x1d0] sm:$0xff]  ;;  %v247_v55 = vunpack.c.l.s4 %v3428_v54  ;;  %v250_v59 = vshrl.u32 %v249_v56, 7 }
  0x1b   :  { %2756 = vmatpush1.bf16.msra.mxu1 %v3694_v21  ;;  %2726 = vmatprep.subr.bf16.mxu0 %v3696_v23  ;;  %v3738_v43 = vpack.c.bf16 %v97_v34, %v93_v33  ;;  %v96_v46 = vld [vmem:[%s4712_s3 + $0x1f0] sm:$0xff]  ;;  %v3747_v47 = vpack.c.bf16 %v94_v42, %v90_v41  ;;  %v27_v50 = vld [vmem:[%s4711_s2] sm:$0x3] }
  0x1c   :  { %2758 = vmatprep.subr.bf16.mxu1 %v3705_v28  ;;  %v3751_v48 = vpack.c.bf16 %v96_v46, %v92_v45  ;;  %28 = vst [vmem:[#allocation3] sm:$0x3] %v27_v50  ;;  %v248_v58 = vunpack.c.0.s8 %v247_v55  ;;  %v31_v14 = vld [vmem:[%s4709_s0] ss:$8 sm:$0xf] }
  0x1d   :  { %v2683_v15 = vld [vmem:[%s4709_s0 + $0x20] ss:$8 sm:$0xf] }
  0x1e   :  { %2728 = vmatpush1.bf16.msra.mxu0 %v3723_v36  ;;  %v3795_v61 = vsub.s32 %v248_v58, %v250_v59 }
  0x1f   :  { %2760 = vmatpush1.bf16.msra.mxu1 %v3727_v37  ;;  %2730 = vmatprep.subr.bf16.mxu0 %v3729_v38  ;;  %v29_v49 = vld [vmem:[#allocation2] sm:$0x3] }
  0x20   :  { %2762 = vmatprep.subr.bf16.mxu1 %v3738_v43 }
  0x22   :  { %2732 = vmatpush1.bf16.msra.mxu0 %v3747_v47 }
  0x23   :  { %2764 = vmatpush1.bf16.msra.mxu1 %v3751_v48  ;;  %2766 = vmatprep.subr.bf16.mxu0 %v3472_v3  ;;  %v2684_v50 = vld.sshfl [vmem:[#allocation3] sm:$0x11 pattern:$0x75316420] }
  0x24   :  { %2798 = vmatprep.subr.bf16.mxu1 %v3485_v8  ;;  %v328_v58 = vcombine.high %v2684_v50, %v2684_v50 }
  0x25   :  { %163 = vmatmul.mubr.f32.vlgmr.msra.gmra.mrb[0].mxu0 %v29_v49 }
  0x26   :  { %234 = vmatmul.mubr.f32.vlgmr.msra.gmra.mrb[0].mxu1 %v29_v49  ;;  %2768 = vmatpush1.bf16.msra.mxu0 %v3487_v9 }
  0x27   :  { %2800 = vmatpush1.bf16.msra.mxu1 %v3499_v13  ;;  %2770 = vmatprep.subr.bf16.mxu0 %v3512_v17 }
  0x28   :  { %2802 = vmatprep.subr.bf16.mxu1 %v3514_v18  ;;  %509 = vmatprep.mubr.f32.mxu0 %v3427_v7 }
  0x29   :  { %580 = vmatprep.mubr.f32.mxu1 %v3427_v7 }
  0x2a   :  { %2772 = vmatpush1.bf16.msra.mxu0 %v3526_v22 }
  0x2b   :  { %2804 = vmatpush1.bf16.msra.mxu1 %v3539_v26  ;;  %2774 = vmatprep.subr.bf16.mxu0 %v3541_v27 }
  0x2c   :  { %2806 = vmatprep.subr.bf16.mxu1 %v3552_v31 }
  0x2e   :  { %2776 = vmatpush1.bf16.msra.mxu0 %v3564_v35 }
  0x2f   :  { %2808 = vmatpush1.bf16.msra.mxu1 %v3577_v39  ;;  %2778 = vmatprep.subr.bf16.mxu0 %v3579_v40 }
  0x30   :  { %2810 = vmatprep.subr.bf16.mxu1 %v3591_v44 }
  0x32   :  { %2780 = vmatpush1.bf16.msra.mxu0 %v3612_v51 }
  0x33   :  { %2812 = vmatpush1.bf16.msra.mxu1 %v3616_v52  ;;  %2782 = vmatprep.subr.bf16.mxu0 %v3618_v53 }
  0x34   :  { %2814 = vmatprep.subr.bf16.mxu1 %v3630_v57 }
  0x36   :  { %2784 = vmatpush1.bf16.msra.mxu0 %v3648_v63 }
  0x37   :  { %2816 = vmatpush1.bf16.msra.mxu1 %v3652_v0  ;;  %2786 = vmatprep.subr.bf16.mxu0 %v3654_v1 }
  0x38   :  { %2818 = vmatprep.subr.bf16.mxu1 %v3666_v6 }
  0x3a   :  { %2788 = vmatpush1.bf16.msra.mxu0 %v3684_v16 }
  0x3b   :  { %2820 = vmatpush1.bf16.msra.mxu1 %v3694_v21  ;;  %2790 = vmatprep.subr.bf16.mxu0 %v3696_v23 }
  0x3c   :  { %2822 = vmatprep.subr.bf16.mxu1 %v3705_v28 }
  0x3e   :  { %2792 = vmatpush1.bf16.msra.mxu0 %v3723_v36 }
  0x3f   :  { %2824 = vmatpush1.bf16.msra.mxu1 %v3727_v37  ;;  %2794 = vmatprep.subr.bf16.mxu0 %v3729_v38 }
  0x40   :  { %2826 = vmatprep.subr.bf16.mxu1 %v3738_v43 }
  0x42   :  { %2796 = vmatpush1.bf16.msra.mxu0 %v3747_v47 }
  0x43   :  { %2828 = vmatpush1.bf16.msra.mxu1 %v3751_v48  ;;  %2830 = vmatprep.subr.bf16.mxu0 %v3472_v3 }
  0x44   :  { %2862 = vmatprep.subr.bf16.mxu1 %v3485_v8 }
  0xf8   :  { %v164_v60 = vpop.f32.mrb[0].mxu0 }
  0xf9   :  { %v235_v62 = vpop.f32.mrb[0].mxu1  ;;  %v166_v2 = vpop.f32.mrb[1].mxu0 }
  0xfa   :  { %v244_v4 = vcombine.low %v164_v60, %v166_v2  ;;  %v237_v5 = vpop.f32.mrb[1].mxu1 }
  0xfb   :  { %v245_v3 = vcombine.low %v235_v62, %v237_v5 }
  0xfc   :  { %v252_v8 = vrot.slane %v244_v4, %v3795_v61 }
  0xfd   :  { %v259_v10 = vrot.slane %v245_v3, %v3795_v61 }
  0xff   :  { %v260_v11 = vcombine.low %v252_v8, %v259_v10  ;;  %v261_v12 = vcombine.high %v252_v8, %v259_v10  ;;  %v335_v8 = vrot.slane %v2684_v50, %v3795_v61 }
 0x101   :  { %v268_v19 = vrot.slane %v260_v11, %v3795_v61  ;;  %v275_v20 = vrot.slane %v261_v12, %v3795_v61  ;;  %v342_v12 = vrot.slane %v328_v58, %v3795_v61 }
 0x103   :  { %v278_v24 = vadd.f32 %v268_v19, %v31_v14  ;;  %v279_v25 = vadd.f32 %v2683_v15, %v275_v20 }
 0x105   :  { %v280_v29 = vmul.f32 0.5, %v278_v24  ;;  %v281_v30 = vmul.f32 0.5, %v279_v25  ;;  %v290_v32 = vrot.slane %v278_v24, 1  ;;  %v291_v33 = vrot.slane %v279_v25, 1 }
 0x106   :  { %v314_v42 = vrot.slane %v278_v24, 3  ;;  %v315_v45 = vrot.slane %v279_v25, 3  ;;  %v302_v46 = vrot.slane %v278_v24, 2  ;;  %v303_v49 = vrot.slane %v279_v25, 2 }
 0x107   :  { %3219 = vtanh.f32 %v280_v29  ;;  %v294_v34 = vmul.f32 0.5, %v290_v32  ;;  %v295_v41 = vmul.f32 0.5, %v291_v33 }
 0x108   :  { %3221 = vtanh.f32 %v281_v30  ;;  %v306_v54 = vmul.f32 0.5, %v302_v46  ;;  %v307_v56 = vmul.f32 0.5, %v303_v49 }
 0x109   :  { %3223 = vtanh.f32 %v294_v34 }
 0x10a   :  { %3225 = vtanh.f32 %v295_v41 }
 0x10b   :  { %3227 = vtanh.f32 %v314_v42 }
 0x10c   :  { %3229 = vtanh.f32 %v315_v45 }
 0x10d   :  { %3231 = vtanh.f32 %v306_v54 }
 0x10e   :  { %3233 = vtanh.f32 %v307_v56 }
 0x111   :  { %v3220_v55 = vpop.eup %3219 }
 0x112   :  { %v3222_v59 = vpop.eup %3221  ;;  %v284_v60 = vmul.f32 0.5, %v3220_v55 }
 0x113   :  { %v3224_v62 = vpop.eup %3223  ;;  %v285_v2 = vmul.f32 0.5, %v3222_v59 }
 0x114   :  { %v3226_v4 = vpop.eup %3225  ;;  %v286_v5 = vadd.f32 0.5, %v284_v60  ;;  %v298_v3 = vmul.f32 0.5, %v3224_v62 }
 0x115   :  { %v287_v10 = vadd.f32 0.5, %v285_v2  ;;  %v299_v11 = vmul.f32 0.5, %v3226_v4  ;;  %v3228_v15 = vpop.eup %3227 }
 0x116   :  { %v300_v14 = vadd.f32 0.5, %v298_v3  ;;  %v3230_v20 = vpop.eup %3229  ;;  %v345_v24 = vmul.f32 %v335_v8, %v286_v5 }
 0x117   :  { %v301_v19 = vadd.f32 0.5, %v299_v11  ;;  %v346_v29 = vmul.f32 %v342_v12, %v287_v10  ;;  %v3232_v34 = vpop.eup %3231 }
 0x118   :  { %v347_v25 = vmul.f32 %v3228_v15, %v300_v14  ;;  %v3234_v41 = vpop.eup %3233  ;;  %v310_v42 = vmul.f32 0.5, %v3232_v34 }
 0x119   :  { %v348_v30 = vmul.f32 %v3230_v20, %v301_v19  ;;  %v311_v45 = vmul.f32 0.5, %v3234_v41 }
 0x11a   :  { %v3809_v32 = vadd.f32 %v347_v25, %v345_v24  ;;  %v312_v46 = vadd.f32 0.5, %v310_v42 }
 0x11b   :  { %v3811_v33 = vadd.f32 %v348_v30, %v346_v29  ;;  %v313_v50 = vadd.f32 0.5, %v311_v45 }
 0x11c   :  { %357 = vst [vmem:[#allocation6] sm:$0x1] %v3809_v32  ;;  %3235 = vtanh.f32 %v3809_v32 }
 0x11d   :  { %358 = vst [vmem:[#allocation6 + $0x8] sm:$0x1] %v3811_v33  ;;  %3237 = vtanh.f32 %v3811_v33 }
 0x126   :  { %v3236_v49 = vpop.eup %3235 }
 0x127   :  { %v3238_v54 = vpop.eup %3237  ;;  %v353_v55 = vmul.f32 %v3236_v49, %v312_v46 }
 0x128   :  { %v354_v56 = vmul.f32 %v3238_v54, %v313_v50 }
 0x129   :  { %355 = vst [vmem:[#allocation4] sm:$0x1] %v353_v55 }
 0x12a   :  { %356 = vst [vmem:[#allocation4 + $0x8] sm:$0x1] %v354_v56  ;;  %v429_v58 = vcombine.low %v353_v55, %v354_v56 }
 0x12c   :  { %v436_v59 = vrot.slane %v429_v58, %v3795_v61 }
 0x12e   :  { %v443_v60 = vrot.slane %v436_v59, %v3795_v61 }
 0x130   :  { %510 = vmatmul.mubr.f32.vlgmr.msra.gmra.mrb[2].mxu0 %v443_v60  ;;  %581 = vmatmul.mubr.f32.vlgmr.msra.gmra.mrb[2].mxu1 %v443_v60  ;;  %v1008_v60 = vld [vmem:[%s4712_s3 + $0x8] sm:$0xff] }
 0x131   :  { %2832 = vmatpush1.bf16.msra.mxu0 %v3487_v9  ;;  %2864 = vmatpush1.bf16.msra.mxu1 %v3499_v13 }
 0x132   :  { %2834 = vmatprep.subr.bf16.mxu0 %v3512_v17  ;;  %2866 = vmatprep.subr.bf16.mxu1 %v3514_v18 }
 0x133   :  { %831 = vmatprep.mubr.f32.mxu0 %v3427_v7  ;;  %902 = vmatprep.mubr.f32.mxu1 %v3427_v7 }
 0x135   :  { %2836 = vmatpush1.bf16.msra.mxu0 %v3526_v22  ;;  %2868 = vmatpush1.bf16.msra.mxu1 %v3539_v26 }
 0x136   :  { %2838 = vmatprep.subr.bf16.mxu0 %v3541_v27  ;;  %2870 = vmatprep.subr.bf16.mxu1 %v3552_v31 }
 0x139   :  { %2840 = vmatpush1.bf16.msra.mxu0 %v3564_v35  ;;  %2872 = vmatpush1.bf16.msra.mxu1 %v3577_v39 }
 0x13a   :  { %2842 = vmatprep.subr.bf16.mxu0 %v3579_v40  ;;  %2874 = vmatprep.subr.bf16.mxu1 %v3591_v44  ;;  %v2685_v40 = vld [vmem:[%s4709_s0 + $0x1] ss:$8 sm:$0xf] }
 0x13b   :  { %v2686_v44 = vld [vmem:[%s4709_s0 + $0x21] ss:$8 sm:$0xf] }
 0x13d   :  { %2844 = vmatpush1.bf16.msra.mxu0 %v3612_v51  ;;  %2876 = vmatpush1.bf16.msra.mxu1 %v3616_v52 }
 0x13e   :  { %2846 = vmatprep.subr.bf16.mxu0 %v3618_v53  ;;  %2878 = vmatprep.subr.bf16.mxu1 %v3630_v57 }
 0x141   :  { %2848 = vmatpush1.bf16.msra.mxu0 %v3648_v63  ;;  %2880 = vmatpush1.bf16.msra.mxu1 %v3652_v0 }
 0x142   :  { %2850 = vmatprep.subr.bf16.mxu0 %v3654_v1  ;;  %2882 = vmatprep.subr.bf16.mxu1 %v3666_v6 }
 0x145   :  { %2852 = vmatpush1.bf16.msra.mxu0 %v3684_v16  ;;  %2884 = vmatpush1.bf16.msra.mxu1 %v3694_v21 }
 0x146   :  { %2854 = vmatprep.subr.bf16.mxu0 %v3696_v23  ;;  %2886 = vmatprep.subr.bf16.mxu1 %v3705_v28 }
 0x149   :  { %2856 = vmatpush1.bf16.msra.mxu0 %v3723_v36  ;;  %2888 = vmatpush1.bf16.msra.mxu1 %v3727_v37 }
 0x14a   :  { %2858 = vmatprep.subr.bf16.mxu0 %v3729_v38  ;;  %2890 = vmatprep.subr.bf16.mxu1 %v3738_v43 }
 0x14d   :  { %2860 = vmatpush1.bf16.msra.mxu0 %v3747_v47  ;;  %2892 = vmatpush1.bf16.msra.mxu1 %v3751_v48 }
 0x203   :  { %v511_v9 = vpop.f32.mrb[2].mxu0  ;;  %v582_v13 = vpop.f32.mrb[2].mxu1 }
 0x204   :  { %v513_v17 = vpop.f32.mrb[3].mxu0  ;;  %v584_v18 = vpop.f32.mrb[3].mxu1 }
 0x205   :  { %v591_v22 = vcombine.low %v511_v9, %v513_v17  ;;  %v592_v26 = vcombine.low %v582_v13, %v584_v18  ;;  %v1012_v9 = vld [vmem:[%s4712_s3 + $0x28] sm:$0xff]  ;;  %v1010_v13 = vld [vmem:[%s4712_s3 + $0x18] sm:$0xff] }
 0x206   :  { %v3884_v17 = vpack.c.bf16 %v1012_v9, %v1008_v60  ;;  %v1014_v18 = vld [vmem:[%s4712_s3 + $0x38] sm:$0xff]  ;;  %v1052_v60 = vld [vmem:[%s4712_s3 + $0x168] sm:$0xff] }
 0x207   :  { %v599_v27 = vrot.slane %v591_v22, %v3795_v61  ;;  %v606_v31 = vrot.slane %v592_v26, %v3795_v61  ;;  %v1007_v22 = vld [vmem:[%s4712_s3] sm:$0xff]  ;;  %v1050_v9 = vld [vmem:[%s4712_s3 + $0x158] sm:$0xff] }
 0x208   :  { %v1011_v26 = vld [vmem:[%s4712_s3 + $0x20] sm:$0xff]  ;;  %2894 = vmatprep.subr.bf16.mxu0 %v3884_v17 }
 0x209   :  { %v607_v35 = vcombine.low %v599_v27, %v606_v31  ;;  %v608_v39 = vcombine.high %v599_v27, %v606_v31  ;;  %v3895_v27 = vpack.c.bf16 %v1014_v18, %v1010_v13  ;;  %v3897_v31 = vpack.c.bf16 %v1011_v26, %v1007_v22  ;;  %v1054_v22 = vld [vmem:[%s4712_s3 + $0x178] sm:$0xff]  ;;  %v1047_v26 = vld [vmem:[%s4712_s3 + $0x140] sm:$0xff] }
 0x20b   :  { %v615_v51 = vrot.slane %v607_v35, %v3795_v61  ;;  %v622_v52 = vrot.slane %v608_v39, %v3795_v61  ;;  %v1009_v35 = vld [vmem:[%s4712_s3 + $0x10] sm:$0xff]  ;;  %2926 = vmatprep.subr.bf16.mxu1 %v3895_v27 }
 0x20c   :  { %v1013_v39 = vld [vmem:[%s4712_s3 + $0x30] sm:$0xff] }
 0x20d   :  { %v625_v53 = vadd.f32 %v2685_v40, %v615_v51  ;;  %v626_v57 = vadd.f32 %v2686_v44, %v622_v52  ;;  %v3906_v40 = vpack.c.bf16 %v1013_v39, %v1009_v35  ;;  %v1016_v44 = vld [vmem:[%s4712_s3 + $0x48] sm:$0xff]  ;;  %v1018_v52 = vld [vmem:[%s4712_s3 + $0x58] sm:$0xff]  ;;  %v1051_v35 = vld [vmem:[%s4712_s3 + $0x160] sm:$0xff]  ;;  %v4073_v39 = vpack.c.bf16 %v1054_v22, %v1050_v9 }
 0x20e   :  { %v1020_v51 = vld [vmem:[%s4712_s3 + $0x68] sm:$0xff] }
 0x20f   :  { %v627_v63 = vmul.f32 0.5, %v625_v53  ;;  %v628_v0 = vmul.f32 0.5, %v626_v57  ;;  %v637_v1 = vrot.slane %v625_v53, 1  ;;  %v638_v6 = vrot.slane %v626_v57, 1 }
 0x210   :  { %v661_v23 = vrot.slane %v625_v53, 3  ;;  %v662_v28 = vrot.slane %v626_v57, 3  ;;  %v649_v36 = vrot.slane %v625_v53, 2  ;;  %v650_v37 = vrot.slane %v626_v57, 2  ;;  %v1022_v57 = vld [vmem:[%s4712_s3 + $0x78] sm:$0xff] }
 0x211   :  { %3239 = vtanh.f32 %v627_v63  ;;  %v641_v16 = vmul.f32 0.5, %v637_v1  ;;  %v642_v21 = vmul.f32 0.5, %v638_v6  ;;  %v3920_v53 = vpack.c.bf16 %v1020_v51, %v1016_v44  ;;  %v1015_v63 = vld [vmem:[%s4712_s3 + $0x40] sm:$0xff]  ;;  %v1049_v44 = vld [vmem:[%s4712_s3 + $0x150] sm:$0xff] }
 0x212   :  { %3241 = vtanh.f32 %v628_v0  ;;  %v653_v38 = vmul.f32 0.5, %v649_v36  ;;  %v654_v47 = vmul.f32 0.5, %v650_v37  ;;  %v1019_v0 = vld [vmem:[%s4712_s3 + $0x60] sm:$0xff]  ;;  %v3931_v1 = vpack.c.bf16 %v1022_v57, %v1018_v52  ;;  %v1028_v36 = vld [vmem:[%s4712_s3 + $0xa8] sm:$0xff]  ;;  %v1026_v37 = vld [vmem:[%s4712_s3 + $0x98] sm:$0xff] }
 0x213   :  { %3243 = vtanh.f32 %v641_v16  ;;  %v3933_v6 = vpack.c.bf16 %v1019_v0, %v1015_v63  ;;  %v1017_v16 = vld [vmem:[%s4712_s3 + $0x50] sm:$0xff]  ;;  %v1056_v52 = vld [vmem:[%s4712_s3 + $0x188] sm:$0xff]  ;;  %v1058_v63 = vld [vmem:[%s4712_s3 + $0x198] sm:$0xff] }
 0x214   :  { %3245 = vtanh.f32 %v642_v21  ;;  %v1021_v21 = vld [vmem:[%s4712_s3 + $0x70] sm:$0xff]  ;;  %v1060_v57 = vld [vmem:[%s4712_s3 + $0x1a8] sm:$0xff]  ;;  %v1062_v0 = vld [vmem:[%s4712_s3 + $0x1b8] sm:$0xff] }
 0x215   :  { %3247 = vtanh.f32 %v661_v23  ;;  %v3942_v23 = vpack.c.bf16 %v1021_v21, %v1017_v16  ;;  %v1053_v51 = vld [vmem:[%s4712_s3 + $0x170] sm:$0xff]  ;;  %v4094_v16 = vpack.c.bf16 %v1051_v35, %v1047_v26 }
 0x216   :  { %3249 = vtanh.f32 %v662_v28  ;;  %v1024_v28 = vld [vmem:[%s4712_s3 + $0x88] sm:$0xff]  ;;  %v4098_v21 = vpack.c.bf16 %v1053_v51, %v1049_v44 }
 0x217   :  { %3251 = vtanh.f32 %v653_v38  ;;  %v3956_v38 = vpack.c.bf16 %v1028_v36, %v1024_v28  ;;  %v4100_v28 = vpack.c.bf16 %v1060_v57, %v1056_v52  ;;  %v1055_v36 = vld [vmem:[%s4712_s3 + $0x180] sm:$0xff] }
 0x218   :  { %3253 = vtanh.f32 %v654_v47  ;;  %v1023_v47 = vld [vmem:[%s4712_s3 + $0x80] sm:$0xff] }
 0x219   :  { %v2687_v44 = vld [vmem:[%s4709_s0 + $0x2] ss:$8 sm:$0xf] }
 0x21a   :  { %v2688_v51 = vld [vmem:[%s4709_s0 + $0x22] ss:$8 sm:$0xf] }
 0x21b   :  { %v3240_v43 = vpop.eup %3239 }
 0x21c   :  { %v3242_v48 = vpop.eup %3241  ;;  %v631_v62 = vmul.f32 0.5, %v3240_v43  ;;  %v1030_v43 = vld [vmem:[%s4712_s3 + $0xb8] sm:$0xff] }
 0x21d   :  { %v3244_v2 = vpop.eup %3243  ;;  %v632_v4 = vmul.f32 0.5, %v3242_v48  ;;  %v1027_v48 = vld [vmem:[%s4712_s3 + $0xa0] sm:$0xff] }
 0x21e   :  { %v3246_v5 = vpop.eup %3245  ;;  %v633_v3 = vadd.f32 0.5, %v631_v62  ;;  %v645_v8 = vmul.f32 0.5, %v3244_v2  ;;  %v3967_v62 = vpack.c.bf16 %v1030_v43, %v1026_v37  ;;  %v3969_v2 = vpack.c.bf16 %v1027_v48, %v1023_v47  ;;  %v1059_v37 = vld [vmem:[%s4712_s3 + $0x1a0] sm:$0xff]  ;;  %v1057_v43 = vld [vmem:[%s4712_s3 + $0x190] sm:$0xff] }
 0x21f   :  { %v634_v10 = vadd.f32 0.5, %v632_v4  ;;  %v646_v11 = vmul.f32 0.5, %v3246_v5  ;;  %v3248_v14 = vpop.eup %3247  ;;  %v1025_v4 = vld [vmem:[%s4712_s3 + $0x90] sm:$0xff]  ;;  %v4112_v47 = vpack.c.bf16 %v1062_v0, %v1058_v63 }
 0x220   :  { %v647_v12 = vadd.f32 0.5, %v645_v8  ;;  %v3250_v19 = vpop.eup %3249  ;;  %v667_v20 = vmul.f32 %v633_v3, %v3809_v32  ;;  %v1029_v5 = vld [vmem:[%s4712_s3 + $0xb0] sm:$0xff]  ;;  %v1032_v3 = vld [vmem:[%s4712_s3 + $0xc8] sm:$0xff] }
 0x221   :  { %v648_v15 = vadd.f32 0.5, %v646_v11  ;;  %v668_v25 = vmul.f32 %v634_v10, %v3811_v33  ;;  %v3252_v41 = vpop.eup %3251  ;;  %v3981_v8 = vpack.c.bf16 %v1029_v5, %v1025_v4  ;;  %v1036_v10 = vld [vmem:[%s4712_s3 + $0xe8] sm:$0xff]  ;;  %v1034_v11 = vld [vmem:[%s4712_s3 + $0xd8] sm:$0xff]  ;;  %v1061_v48 = vld [vmem:[%s4712_s3 + $0x1b0] sm:$0xff] }
 0x222   :  { %v669_v24 = vmul.f32 %v3248_v14, %v647_v12  ;;  %v3254_v42 = vpop.eup %3253  ;;  %v657_v45 = vmul.f32 0.5, %v3252_v41  ;;  %v1038_v12 = vld [vmem:[%s4712_s3 + $0xf8] sm:$0xff]  ;;  %v3994_v14 = vpack.c.bf16 %v1036_v10, %v1032_v3  ;;  %v1040_v41 = vld [vmem:[%s4712_s3 + $0x108] sm:$0xff] }
 0x223   :  { %v670_v29 = vmul.f32 %v3250_v19, %v648_v15  ;;  %v658_v32 = vmul.f32 0.5, %v3254_v42  ;;  %v3996_v15 = vpack.c.bf16 %v1038_v12, %v1034_v11  ;;  %v1031_v19 = vld [vmem:[%s4712_s3 + $0xc0] sm:$0xff]  ;;  %v1044_v42 = vld [vmem:[%s4712_s3 + $0x128] sm:$0xff]  ;;  %v1066_v3 = vld [vmem:[%s4712_s3 + $0x1d8] sm:$0xff]  ;;  %v4130_v11 = vpack.c.bf16 %v1059_v37, %v1055_v36 }
 0x224   :  { %v3863_v30 = vadd.f32 %v669_v24, %v667_v20  ;;  %v659_v46 = vadd.f32 0.5, %v657_v45  ;;  %v1035_v20 = vld [vmem:[%s4712_s3 + $0xe0] sm:$0xff]  ;;  %v1033_v24 = vld [vmem:[%s4712_s3 + $0xd0] sm:$0xff]  ;;  %v1064_v4 = vld [vmem:[%s4712_s3 + $0x1c8] sm:$0xff]  ;;  %v4134_v12 = vpack.c.bf16 %v1061_v48, %v1057_v43 }
 0x225   :  { %v3865_v34 = vadd.f32 %v670_v29, %v668_v25  ;;  %v660_v33 = vadd.f32 0.5, %v658_v32  ;;  %v4008_v25 = vpack.c.bf16 %v1035_v20, %v1031_v19  ;;  %v1037_v29 = vld [vmem:[%s4712_s3 + $0xf0] sm:$0xff]  ;;  %v4023_v32 = vpack.c.bf16 %v1044_v42, %v1040_v41  ;;  %v1068_v5 = vld [vmem:[%s4712_s3 + $0x1e8] sm:$0xff]  ;;  %v1070_v10 = vld [vmem:[%s4712_s3 + $0x1f8] sm:$0xff] }
 0x226   :  { %679 = vst [vmem:[#allocation6 + $0x1] sm:$0x1] %v3863_v30  ;;  %3255 = vtanh.f32 %v3863_v30  ;;  %v4021_v45 = vpack.c.bf16 %v1037_v29, %v1033_v24  ;;  %v4136_v19 = vpack.c.bf16 %v1068_v5, %v1064_v4  ;;  %v1063_v20 = vld [vmem:[%s4712_s3 + $0x1c0] sm:$0xff]  ;;  %v4145_v29 = vpack.c.bf16 %v1070_v10, %v1066_v3  ;;  %v1065_v41 = vld [vmem:[%s4712_s3 + $0x1d0] sm:$0xff] }
 0x227   :  { %680 = vst [vmem:[#allocation6 + $0x9] sm:$0x1] %v3865_v34  ;;  %3257 = vtanh.f32 %v3865_v34  ;;  %v1067_v24 = vld [vmem:[%s4712_s3 + $0x1e0] sm:$0xff]  ;;  %v1069_v42 = vld [vmem:[%s4712_s3 + $0x1f0] sm:$0xff] }
 0x230   :  { %v3256_v49 = vpop.eup %3255 }
 0x231   :  { %v3258_v50 = vpop.eup %3257  ;;  %v675_v54 = vmul.f32 %v3256_v49, %v659_v46  ;;  %v1042_v46 = vld [vmem:[%s4712_s3 + $0x118] sm:$0xff] }
 0x232   :  { %v676_v55 = vmul.f32 %v3258_v50, %v660_v33  ;;  %v1046_v49 = vld [vmem:[%s4712_s3 + $0x138] sm:$0xff]  ;;  %v1039_v33 = vld [vmem:[%s4712_s3 + $0x100] sm:$0xff] }
 0x233   :  { %677 = vst [vmem:[#allocation4 + $0x1] sm:$0x1] %v675_v54  ;;  %v4034_v50 = vpack.c.bf16 %v1046_v49, %v1042_v46  ;;  %v4154_v46 = vpack.c.bf16 %v1067_v24, %v1063_v20  ;;  %v4158_v49 = vpack.c.bf16 %v1069_v42, %v1065_v41 }
 0x234   :  { %678 = vst [vmem:[#allocation4 + $0x9] sm:$0x1] %v676_v55  ;;  %v751_v56 = vcombine.low %v675_v54, %v676_v55  ;;  %v1043_v54 = vld [vmem:[%s4712_s3 + $0x120] sm:$0xff]  ;;  %v1041_v55 = vld [vmem:[%s4712_s3 + $0x110] sm:$0xff] }
 0x236   :  { %v758_v58 = vrot.slane %v751_v56, %v3795_v61  ;;  %v1045_v56 = vld [vmem:[%s4712_s3 + $0x130] sm:$0xff] }
 0x237   :  { %v4059_v13 = vpack.c.bf16 %v1045_v56, %v1041_v55 }
 0x238   :  { %v765_v59 = vrot.slane %v758_v58, %v3795_v61  ;;  %v4046_v58 = vpack.c.bf16 %v1043_v54, %v1039_v33 }
 0x23a   :  { %832 = vmatmul.mubr.f32.vlgmr.msra.gmra.mrb[4].mxu0 %v765_v59  ;;  %903 = vmatmul.mubr.f32.vlgmr.msra.gmra.mrb[4].mxu1 %v765_v59  ;;  %v1048_v59 = vld [vmem:[%s4712_s3 + $0x148] sm:$0xff] }
 0x23b   :  { %1153 = vmatprep.mubr.f32.mxu0 %v3427_v7  ;;  %1224 = vmatprep.mubr.f32.mxu1 %v3427_v7  ;;  %v4061_v18 = vpack.c.bf16 %v1052_v60, %v1048_v59 }
 0x23c   :  { %2896 = vmatpush1.bf16.msra.mxu0 %v3897_v31  ;;  %2928 = vmatpush1.bf16.msra.mxu1 %v3906_v40 }
 0x23d   :  { %2898 = vmatprep.subr.bf16.mxu0 %v3920_v53  ;;  %2930 = vmatprep.subr.bf16.mxu1 %v3931_v1 }
 0x240   :  { %2900 = vmatpush1.bf16.msra.mxu0 %v3933_v6  ;;  %2932 = vmatpush1.bf16.msra.mxu1 %v3942_v23 }
 0x241   :  { %2902 = vmatprep.subr.bf16.mxu0 %v3956_v38  ;;  %2934 = vmatprep.subr.bf16.mxu1 %v3967_v62 }
 0x244   :  { %2904 = vmatpush1.bf16.msra.mxu0 %v3969_v2  ;;  %2936 = vmatpush1.bf16.msra.mxu1 %v3981_v8 }
 0x245   :  { %2906 = vmatprep.subr.bf16.mxu0 %v3994_v14  ;;  %2938 = vmatprep.subr.bf16.mxu1 %v3996_v15 }
 0x248   :  { %2908 = vmatpush1.bf16.msra.mxu0 %v4008_v25  ;;  %2940 = vmatpush1.bf16.msra.mxu1 %v4021_v45 }
 0x249   :  { %2910 = vmatprep.subr.bf16.mxu0 %v4023_v32  ;;  %2942 = vmatprep.subr.bf16.mxu1 %v4034_v50 }
 0x24c   :  { %2912 = vmatpush1.bf16.msra.mxu0 %v4046_v58  ;;  %2944 = vmatpush1.bf16.msra.mxu1 %v4059_v13 }
 0x24d   :  { %2914 = vmatprep.subr.bf16.mxu0 %v4061_v18  ;;  %2946 = vmatprep.subr.bf16.mxu1 %v4073_v39 }
 0x250   :  { %2916 = vmatpush1.bf16.msra.mxu0 %v4094_v16  ;;  %2948 = vmatpush1.bf16.msra.mxu1 %v4098_v21 }
 0x251   :  { %2918 = vmatprep.subr.bf16.mxu0 %v4100_v28  ;;  %2950 = vmatprep.subr.bf16.mxu1 %v4112_v47 }
 0x254   :  { %2920 = vmatpush1.bf16.msra.mxu0 %v4130_v11  ;;  %2952 = vmatpush1.bf16.msra.mxu1 %v4134_v12 }
 0x255   :  { %2922 = vmatprep.subr.bf16.mxu0 %v4136_v19  ;;  %2954 = vmatprep.subr.bf16.mxu1 %v4145_v29 }
 0x258   :  { %2924 = vmatpush1.bf16.msra.mxu0 %v4154_v46  ;;  %2956 = vmatpush1.bf16.msra.mxu1 %v4158_v49 }
 0x259   :  { %2958 = vmatprep.subr.bf16.mxu0 %v3884_v17  ;;  %2990 = vmatprep.subr.bf16.mxu1 %v3895_v27 }
 0x30d   :  { %v833_v33 = vpop.f32.mrb[4].mxu0  ;;  %v904_v54 = vpop.f32.mrb[4].mxu1 }
 0x30e   :  { %v835_v55 = vpop.f32.mrb[5].mxu0  ;;  %v906_v56 = vpop.f32.mrb[5].mxu1 }
 0x30f   :  { %v913_v59 = vcombine.low %v833_v33, %v835_v55  ;;  %v914_v60 = vcombine.low %v904_v54, %v906_v56 }
 0x311   :  { %v921_v9 = vrot.slane %v913_v59, %v3795_v61  ;;  %v928_v22 = vrot.slane %v914_v60, %v3795_v61 }
 0x313   :  { %v929_v26 = vcombine.low %v921_v9, %v928_v22  ;;  %v930_v35 = vcombine.high %v921_v9, %v928_v22 }
 0x315   :  { %v937_v52 = vrot.slane %v929_v26, %v3795_v61  ;;  %v944_v57 = vrot.slane %v930_v35, %v3795_v61 }
 0x317   :  { %v947_v63 = vadd.f32 %v2687_v44, %v937_v52  ;;  %v948_v0 = vadd.f32 %v2688_v51, %v944_v57 }
 0x319   :  { %v949_v36 = vmul.f32 0.5, %v947_v63  ;;  %v950_v37 = vmul.f32 0.5, %v948_v0  ;;  %v959_v43 = vrot.slane %v947_v63, 1  ;;  %v960_v48 = vrot.slane %v948_v0, 1 }
 0x31a   :  { %v983_v3 = vrot.slane %v947_v63, 3  ;;  %v984_v10 = vrot.slane %v948_v0, 3  ;;  %v971_v20 = vrot.slane %v947_v63, 2  ;;  %v972_v24 = vrot.slane %v948_v0, 2 }
 0x31b   :  { %3259 = vtanh.f32 %v949_v36  ;;  %v963_v4 = vmul.f32 0.5, %v959_v43  ;;  %v964_v5 = vmul.f32 0.5, %v960_v48 }
 0x31c   :  { %3261 = vtanh.f32 %v950_v37  ;;  %v975_v41 = vmul.f32 0.5, %v971_v20  ;;  %v976_v33 = vmul.f32 0.5, %v972_v24 }
 0x31d   :  { %3263 = vtanh.f32 %v963_v4 }
 0x31e   :  { %3265 = vtanh.f32 %v964_v5 }
 0x31f   :  { %3267 = vtanh.f32 %v983_v3 }
 0x320   :  { %3269 = vtanh.f32 %v984_v10 }
 0x321   :  { %3271 = vtanh.f32 %v975_v41 }
 0x322   :  { %3273 = vtanh.f32 %v976_v33 }
 0x325   :  { %v3260_v42 = vpop.eup %3259 }
 0x326   :  { %v3262_v54 = vpop.eup %3261  ;;  %v953_v55 = vmul.f32 0.5, %v3260_v42 }
 0x327   :  { %v3264_v56 = vpop.eup %3263  ;;  %v954_v59 = vmul.f32 0.5, %v3262_v54 }
 0x328   :  { %v3266_v60 = vpop.eup %3265  ;;  %v955_v9 = vadd.f32 0.5, %v953_v55  ;;  %v967_v22 = vmul.f32 0.5, %v3264_v56 }
 0x329   :  { %v956_v26 = vadd.f32 0.5, %v954_v59  ;;  %v968_v35 = vmul.f32 0.5, %v3266_v60  ;;  %v3268_v51 = vpop.eup %3267 }
 0x32a   :  { %v969_v44 = vadd.f32 0.5, %v967_v22  ;;  %v3270_v57 = vpop.eup %3269  ;;  %v989_v63 = vmul.f32 %v955_v9, %v3863_v30 }
 0x32b   :  { %v970_v52 = vadd.f32 0.5, %v968_v35  ;;  %v990_v36 = vmul.f32 %v956_v26, %v3865_v34  ;;  %v3272_v4 = vpop.eup %3271 }
 0x32c   :  { %v991_v0 = vmul.f32 %v3268_v51, %v969_v44  ;;  %v3274_v5 = vpop.eup %3273  ;;  %v979_v3 = vmul.f32 0.5, %v3272_v4 }
 0x32d   :  { %v992_v37 = vmul.f32 %v3270_v57, %v970_v52  ;;  %v980_v30 = vmul.f32 0.5, %v3274_v5  ;;  %v2689_v57 = vld [vmem:[%s4709_s0 + $0x3] ss:$8 sm:$0xf] }
 0x32e   :  { %v4177_v43 = vadd.f32 %v991_v0, %v989_v63  ;;  %v981_v10 = vadd.f32 0.5, %v979_v3 }
 0x32f   :  { %v4179_v48 = vadd.f32 %v992_v37, %v990_v36  ;;  %v982_v34 = vadd.f32 0.5, %v980_v30 }
 0x330   :  { %1001 = vst [vmem:[#allocation6 + $0x2] sm:$0x1] %v4177_v43  ;;  %3275 = vtanh.f32 %v4177_v43 }
 0x331   :  { %1002 = vst [vmem:[#allocation6 + $0xa] sm:$0x1] %v4179_v48  ;;  %3277 = vtanh.f32 %v4179_v48 }
 0x33a   :  { %v3276_v20 = vpop.eup %3275 }
 0x33b   :  { %v3278_v24 = vpop.eup %3277  ;;  %v997_v41 = vmul.f32 %v3276_v20, %v981_v10 }
 0x33c   :  { %v998_v42 = vmul.f32 %v3278_v24, %v982_v34 }
 0x33d   :  { %999 = vst [vmem:[#allocation4 + $0x2] sm:$0x1] %v997_v41 }
 0x33e   :  { %1000 = vst [vmem:[#allocation4 + $0xa] sm:$0x1] %v998_v42  ;;  %v1073_v33 = vcombine.low %v997_v41, %v998_v42 }
 0x340   :  { %v1080_v54 = vrot.slane %v1073_v33, %v3795_v61 }
 0x342   :  { %v1087_v55 = vrot.slane %v1080_v54, %v3795_v61 }
 0x344   :  { %1154 = vmatmul.mubr.f32.vlgmr.msra.gmra.mrb[6].mxu0 %v1087_v55  ;;  %1225 = vmatmul.mubr.f32.vlgmr.msra.gmra.mrb[6].mxu1 %v1087_v55 }
 0x345   :  { %2960 = vmatpush1.bf16.msra.mxu0 %v3897_v31  ;;  %2992 = vmatpush1.bf16.msra.mxu1 %v3906_v40 }
 0x346   :  { %2962 = vmatprep.subr.bf16.mxu0 %v3920_v53  ;;  %2994 = vmatprep.subr.bf16.mxu1 %v3931_v1 }
 0x347   :  { %1475 = vmatprep.mubr.f32.mxu0 %v3427_v7  ;;  %1546 = vmatprep.mubr.f32.mxu1 %v3427_v7 }
 0x349   :  { %2964 = vmatpush1.bf16.msra.mxu0 %v3933_v6  ;;  %2996 = vmatpush1.bf16.msra.mxu1 %v3942_v23 }
 0x34a   :  { %2966 = vmatprep.subr.bf16.mxu0 %v3956_v38  ;;  %2998 = vmatprep.subr.bf16.mxu1 %v3967_v62 }
 0x34d   :  { %2968 = vmatpush1.bf16.msra.mxu0 %v3969_v2  ;;  %3000 = vmatpush1.bf16.msra.mxu1 %v3981_v8 }
 0x34e   :  { %2970 = vmatprep.subr.bf16.mxu0 %v3994_v14  ;;  %3002 = vmatprep.subr.bf16.mxu1 %v3996_v15 }
 0x351   :  { %2972 = vmatpush1.bf16.msra.mxu0 %v4008_v25  ;;  %3004 = vmatpush1.bf16.msra.mxu1 %v4021_v45 }
 0x352   :  { %2974 = vmatprep.subr.bf16.mxu0 %v4023_v32  ;;  %3006 = vmatprep.subr.bf16.mxu1 %v4034_v50 }
 0x355   :  { %2976 = vmatpush1.bf16.msra.mxu0 %v4046_v58  ;;  %3008 = vmatpush1.bf16.msra.mxu1 %v4059_v13 }
 0x356   :  { %2978 = vmatprep.subr.bf16.mxu0 %v4061_v18  ;;  %3010 = vmatprep.subr.bf16.mxu1 %v4073_v39 }
 0x359   :  { %2980 = vmatpush1.bf16.msra.mxu0 %v4094_v16  ;;  %3012 = vmatpush1.bf16.msra.mxu1 %v4098_v21 }
 0x35a   :  { %2982 = vmatprep.subr.bf16.mxu0 %v4100_v28  ;;  %3014 = vmatprep.subr.bf16.mxu1 %v4112_v47 }
 0x35d   :  { %2984 = vmatpush1.bf16.msra.mxu0 %v4130_v11  ;;  %3016 = vmatpush1.bf16.msra.mxu1 %v4134_v12 }
 0x35e   :  { %2986 = vmatprep.subr.bf16.mxu0 %v4136_v19  ;;  %3018 = vmatprep.subr.bf16.mxu1 %v4145_v29 }
 0x361   :  { %2988 = vmatpush1.bf16.msra.mxu0 %v4154_v46  ;;  %3020 = vmatpush1.bf16.msra.mxu1 %v4158_v49 }
 0x362   :  { %3022 = vmatprep.subr.bf16.mxu0 %v3884_v17  ;;  %3054 = vmatprep.subr.bf16.mxu1 %v3895_v27  ;;  %v2690_v17 = vld [vmem:[%s4709_s0 + $0x23] ss:$8 sm:$0xf] }
 0x417   :  { %v1155_v56 = vpop.f32.mrb[6].mxu0  ;;  %v1226_v59 = vpop.f32.mrb[6].mxu1 }
 0x418   :  { %v1157_v60 = vpop.f32.mrb[7].mxu0  ;;  %v1228_v9 = vpop.f32.mrb[7].mxu1 }
 0x419   :  { %v1235_v22 = vcombine.low %v1155_v56, %v1157_v60  ;;  %v1236_v26 = vcombine.low %v1226_v59, %v1228_v9 }
 0x41b   :  { %v1243_v35 = vrot.slane %v1235_v22, %v3795_v61  ;;  %v1250_v44 = vrot.slane %v1236_v26, %v3795_v61 }
 0x41d   :  { %v1251_v51 = vcombine.low %v1243_v35, %v1250_v44  ;;  %v1252_v52 = vcombine.high %v1243_v35, %v1250_v44 }
 0x41f   :  { %v1259_v27 = vrot.slane %v1251_v51, %v3795_v61  ;;  %v1266_v63 = vrot.slane %v1252_v52, %v3795_v61 }
 0x421   :  { %v1269_v0 = vadd.f32 %v2689_v57, %v1259_v27  ;;  %v1270_v36 = vadd.f32 %v2690_v17, %v1266_v63 }
 0x423   :  { %v1271_v37 = vmul.f32 0.5, %v1269_v0  ;;  %v1272_v4 = vmul.f32 0.5, %v1270_v36  ;;  %v1281_v5 = vrot.slane %v1269_v0, 1  ;;  %v1282_v3 = vrot.slane %v1270_v36, 1 }
 0x424   :  { %v1305_v20 = vrot.slane %v1269_v0, 3  ;;  %v1306_v34 = vrot.slane %v1270_v36, 3  ;;  %v1293_v24 = vrot.slane %v1269_v0, 2  ;;  %v1294_v41 = vrot.slane %v1270_v36, 2 }
 0x425   :  { %3279 = vtanh.f32 %v1271_v37  ;;  %v1285_v30 = vmul.f32 0.5, %v1281_v5  ;;  %v1286_v10 = vmul.f32 0.5, %v1282_v3 }
 0x426   :  { %3281 = vtanh.f32 %v1272_v4  ;;  %v1297_v42 = vmul.f32 0.5, %v1293_v24  ;;  %v1298_v54 = vmul.f32 0.5, %v1294_v41 }
 0x427   :  { %3283 = vtanh.f32 %v1285_v30 }
 0x428   :  { %3285 = vtanh.f32 %v1286_v10 }
 0x429   :  { %3287 = vtanh.f32 %v1305_v20 }
 0x42a   :  { %3289 = vtanh.f32 %v1306_v34 }
 0x42b   :  { %3291 = vtanh.f32 %v1297_v42 }
 0x42c   :  { %3293 = vtanh.f32 %v1298_v54 }
 0x42f   :  { %v3280_v33 = vpop.eup %3279 }
 0x430   :  { %v3282_v55 = vpop.eup %3281  ;;  %v1275_v56 = vmul.f32 0.5, %v3280_v33 }
 0x431   :  { %v3284_v59 = vpop.eup %3283  ;;  %v1276_v60 = vmul.f32 0.5, %v3282_v55 }
 0x432   :  { %v3286_v9 = vpop.eup %3285  ;;  %v1277_v22 = vadd.f32 0.5, %v1275_v56  ;;  %v1289_v26 = vmul.f32 0.5, %v3284_v59 }
 0x433   :  { %v1278_v35 = vadd.f32 0.5, %v1276_v60  ;;  %v1290_v44 = vmul.f32 0.5, %v3286_v9  ;;  %v3288_v52 = vpop.eup %3287 }
 0x434   :  { %v1291_v51 = vadd.f32 0.5, %v1289_v26  ;;  %v3290_v17 = vpop.eup %3289  ;;  %v1311_v27 = vmul.f32 %v1277_v22, %v4177_v43 }
 0x435   :  { %v1292_v57 = vadd.f32 0.5, %v1290_v44  ;;  %v1312_v0 = vmul.f32 %v1278_v35, %v4179_v48  ;;  %v3292_v5 = vpop.eup %3291 }
 0x436   :  { %v1313_v63 = vmul.f32 %v3288_v52, %v1291_v51  ;;  %v3294_v3 = vpop.eup %3293  ;;  %v1301_v30 = vmul.f32 0.5, %v3292_v5 }
 0x437   :  { %v1314_v36 = vmul.f32 %v3290_v17, %v1292_v57  ;;  %v1302_v43 = vmul.f32 0.5, %v3294_v3 }
 0x438   :  { %v4233_v37 = vadd.f32 %v1313_v63, %v1311_v27  ;;  %v1303_v10 = vadd.f32 0.5, %v1301_v30 }
 0x439   :  { %v4235_v4 = vadd.f32 %v1314_v36, %v1312_v0  ;;  %v1304_v48 = vadd.f32 0.5, %v1302_v43 }
 0x43a   :  { %1323 = vst [vmem:[#allocation6 + $0x3] sm:$0x1] %v4233_v37  ;;  %3295 = vtanh.f32 %v4233_v37 }
 0x43b   :  { %1324 = vst [vmem:[#allocation6 + $0xb] sm:$0x1] %v4235_v4  ;;  %3297 = vtanh.f32 %v4235_v4 }
 0x444   :  { %v3296_v20 = vpop.eup %3295 }
 0x445   :  { %v3298_v34 = vpop.eup %3297  ;;  %v1319_v24 = vmul.f32 %v3296_v20, %v1303_v10 }
 0x446   :  { %v1320_v41 = vmul.f32 %v3298_v34, %v1304_v48 }
 0x447   :  { %1321 = vst [vmem:[#allocation4 + $0x3] sm:$0x1] %v1319_v24 }
 0x448   :  { %1322 = vst [vmem:[#allocation4 + $0xb] sm:$0x1] %v1320_v41  ;;  %v1395_v42 = vcombine.low %v1319_v24, %v1320_v41 }
 0x44a   :  { %v1402_v33 = vrot.slane %v1395_v42, %v3795_v61 }
 0x44c   :  { %v1409_v54 = vrot.slane %v1402_v33, %v3795_v61 }
 0x44e   :  { %1476 = vmatmul.mubr.f32.vlgmr.msra.gmra.mrb[8].mxu0 %v1409_v54  ;;  %1547 = vmatmul.mubr.f32.vlgmr.msra.gmra.mrb[8].mxu1 %v1409_v54  ;;  %v1974_v54 = vld [vmem:[%s4712_s3 + $0x8] sm:$0xff] }
 0x44f   :  { %3024 = vmatpush1.bf16.msra.mxu0 %v3897_v31  ;;  %3056 = vmatpush1.bf16.msra.mxu1 %v3906_v40 }
 0x450   :  { %3026 = vmatprep.subr.bf16.mxu0 %v3920_v53  ;;  %3058 = vmatprep.subr.bf16.mxu1 %v3931_v1 }
 0x451   :  { %1797 = vmatprep.mubr.f32.mxu0 %v3427_v7  ;;  %1868 = vmatprep.mubr.f32.mxu1 %v3427_v7 }
 0x453   :  { %3028 = vmatpush1.bf16.msra.mxu0 %v3933_v6  ;;  %3060 = vmatpush1.bf16.msra.mxu1 %v3942_v23 }
 0x454   :  { %3030 = vmatprep.subr.bf16.mxu0 %v3956_v38  ;;  %3062 = vmatprep.subr.bf16.mxu1 %v3967_v62 }
 0x457   :  { %3032 = vmatpush1.bf16.msra.mxu0 %v3969_v2  ;;  %3064 = vmatpush1.bf16.msra.mxu1 %v3981_v8 }
 0x458   :  { %3034 = vmatprep.subr.bf16.mxu0 %v3994_v14  ;;  %3066 = vmatprep.subr.bf16.mxu1 %v3996_v15  ;;  %v2691_v14 = vld [vmem:[%s4709_s0 + $0x4] ss:$8 sm:$0xf] }
 0x459   :  { %v2692_v15 = vld [vmem:[%s4709_s0 + $0x24] ss:$8 sm:$0xf] }
 0x45b   :  { %3036 = vmatpush1.bf16.msra.mxu0 %v4008_v25  ;;  %3068 = vmatpush1.bf16.msra.mxu1 %v4021_v45 }
 0x45c   :  { %3038 = vmatprep.subr.bf16.mxu0 %v4023_v32  ;;  %3070 = vmatprep.subr.bf16.mxu1 %v4034_v50 }
 0x45f   :  { %3040 = vmatpush1.bf16.msra.mxu0 %v4046_v58  ;;  %3072 = vmatpush1.bf16.msra.mxu1 %v4059_v13 }
 0x460   :  { %3042 = vmatprep.subr.bf16.mxu0 %v4061_v18  ;;  %3074 = vmatprep.subr.bf16.mxu1 %v4073_v39 }
 0x463   :  { %3044 = vmatpush1.bf16.msra.mxu0 %v4094_v16  ;;  %3076 = vmatpush1.bf16.msra.mxu1 %v4098_v21 }
 0x464   :  { %3046 = vmatprep.subr.bf16.mxu0 %v4100_v28  ;;  %3078 = vmatprep.subr.bf16.mxu1 %v4112_v47 }
 0x467   :  { %3048 = vmatpush1.bf16.msra.mxu0 %v4130_v11  ;;  %3080 = vmatpush1.bf16.msra.mxu1 %v4134_v12 }
 0x468   :  { %3050 = vmatprep.subr.bf16.mxu0 %v4136_v19  ;;  %3082 = vmatprep.subr.bf16.mxu1 %v4145_v29 }
 0x46b   :  { %3052 = vmatpush1.bf16.msra.mxu0 %v4154_v46  ;;  %3084 = vmatpush1.bf16.msra.mxu1 %v4158_v49 }
 0x521   :  { %v1477_v31 = vpop.f32.mrb[8].mxu0  ;;  %v1548_v40 = vpop.f32.mrb[8].mxu1 }
 0x522   :  { %v1479_v53 = vpop.f32.mrb[9].mxu0  ;;  %v1550_v1 = vpop.f32.mrb[9].mxu1 }
 0x523   :  { %v1557_v6 = vcombine.low %v1477_v31, %v1479_v53  ;;  %v1558_v23 = vcombine.low %v1548_v40, %v1550_v1  ;;  %v1978_v31 = vld [vmem:[%s4712_s3 + $0x28] sm:$0xff]  ;;  %v1976_v40 = vld [vmem:[%s4712_s3 + $0x18] sm:$0xff] }
 0x524   :  { %v4308_v53 = vpack.c.bf16 %v1978_v31, %v1974_v54  ;;  %v1980_v1 = vld [vmem:[%s4712_s3 + $0x38] sm:$0xff]  ;;  %v2018_v54 = vld [vmem:[%s4712_s3 + $0x168] sm:$0xff] }
 0x525   :  { %v1565_v38 = vrot.slane %v1557_v6, %v3795_v61  ;;  %v1572_v62 = vrot.slane %v1558_v23, %v3795_v61  ;;  %v1973_v6 = vld [vmem:[%s4712_s3] sm:$0xff]  ;;  %v2016_v31 = vld [vmem:[%s4712_s3 + $0x158] sm:$0xff] }
 0x526   :  { %v1977_v23 = vld [vmem:[%s4712_s3 + $0x20] sm:$0xff]  ;;  %3086 = vmatprep.subr.bf16.mxu0 %v4308_v53 }
 0x527   :  { %v1573_v2 = vcombine.low %v1565_v38, %v1572_v62  ;;  %v1574_v8 = vcombine.high %v1565_v38, %v1572_v62  ;;  %v4319_v38 = vpack.c.bf16 %v1980_v1, %v1976_v40  ;;  %v4321_v62 = vpack.c.bf16 %v1977_v23, %v1973_v6  ;;  %v2020_v6 = vld [vmem:[%s4712_s3 + $0x178] sm:$0xff]  ;;  %v2013_v23 = vld [vmem:[%s4712_s3 + $0x140] sm:$0xff] }
 0x529   :  { %v1581_v25 = vrot.slane %v1573_v2, %v3795_v61  ;;  %v1588_v45 = vrot.slane %v1574_v8, %v3795_v61  ;;  %v1975_v2 = vld [vmem:[%s4712_s3 + $0x10] sm:$0xff]  ;;  %3118 = vmatprep.subr.bf16.mxu1 %v4319_v38 }
 0x52a   :  { %v1979_v8 = vld [vmem:[%s4712_s3 + $0x30] sm:$0xff] }
 0x52b   :  { %v1591_v32 = vadd.f32 %v2691_v14, %v1581_v25  ;;  %v1592_v50 = vadd.f32 %v2692_v15, %v1588_v45  ;;  %v4330_v14 = vpack.c.bf16 %v1979_v8, %v1975_v2  ;;  %v1982_v15 = vld [vmem:[%s4712_s3 + $0x48] sm:$0xff]  ;;  %v1984_v45 = vld [vmem:[%s4712_s3 + $0x58] sm:$0xff]  ;;  %v2017_v2 = vld [vmem:[%s4712_s3 + $0x160] sm:$0xff]  ;;  %v4497_v8 = vpack.c.bf16 %v2020_v6, %v2016_v31 }
 0x52c   :  { %v1986_v25 = vld [vmem:[%s4712_s3 + $0x68] sm:$0xff] }
 0x52d   :  { %v1593_v58 = vmul.f32 0.5, %v1591_v32  ;;  %v1594_v13 = vmul.f32 0.5, %v1592_v50  ;;  %v1603_v18 = vrot.slane %v1591_v32, 1  ;;  %v1604_v39 = vrot.slane %v1592_v50, 1 }
 0x52e   :  { %v1627_v28 = vrot.slane %v1591_v32, 3  ;;  %v1628_v47 = vrot.slane %v1592_v50, 3  ;;  %v1615_v11 = vrot.slane %v1591_v32, 2  ;;  %v1616_v12 = vrot.slane %v1592_v50, 2  ;;  %v1988_v50 = vld [vmem:[%s4712_s3 + $0x78] sm:$0xff] }
 0x52f   :  { %3299 = vtanh.f32 %v1593_v58  ;;  %v1607_v16 = vmul.f32 0.5, %v1603_v18  ;;  %v1608_v21 = vmul.f32 0.5, %v1604_v39  ;;  %v4344_v32 = vpack.c.bf16 %v1986_v25, %v1982_v15  ;;  %v1981_v58 = vld [vmem:[%s4712_s3 + $0x40] sm:$0xff]  ;;  %v2015_v15 = vld [vmem:[%s4712_s3 + $0x150] sm:$0xff] }
 0x530   :  { %3301 = vtanh.f32 %v1594_v13  ;;  %v1619_v19 = vmul.f32 0.5, %v1615_v11  ;;  %v1620_v46 = vmul.f32 0.5, %v1616_v12  ;;  %v1985_v13 = vld [vmem:[%s4712_s3 + $0x60] sm:$0xff]  ;;  %v4355_v18 = vpack.c.bf16 %v1988_v50, %v1984_v45  ;;  %v1994_v11 = vld [vmem:[%s4712_s3 + $0xa8] sm:$0xff]  ;;  %v1992_v12 = vld [vmem:[%s4712_s3 + $0x98] sm:$0xff] }
 0x531   :  { %3303 = vtanh.f32 %v1607_v16  ;;  %v4357_v39 = vpack.c.bf16 %v1985_v13, %v1981_v58  ;;  %v1983_v16 = vld [vmem:[%s4712_s3 + $0x50] sm:$0xff]  ;;  %v2022_v45 = vld [vmem:[%s4712_s3 + $0x188] sm:$0xff]  ;;  %v2024_v58 = vld [vmem:[%s4712_s3 + $0x198] sm:$0xff] }
 0x532   :  { %3305 = vtanh.f32 %v1608_v21  ;;  %v1987_v21 = vld [vmem:[%s4712_s3 + $0x70] sm:$0xff]  ;;  %v2026_v50 = vld [vmem:[%s4712_s3 + $0x1a8] sm:$0xff]  ;;  %v2028_v13 = vld [vmem:[%s4712_s3 + $0x1b8] sm:$0xff] }
 0x533   :  { %3307 = vtanh.f32 %v1627_v28  ;;  %v4366_v28 = vpack.c.bf16 %v1987_v21, %v1983_v16  ;;  %v2019_v25 = vld [vmem:[%s4712_s3 + $0x170] sm:$0xff]  ;;  %v4518_v16 = vpack.c.bf16 %v2017_v2, %v2013_v23 }
 0x534   :  { %3309 = vtanh.f32 %v1628_v47  ;;  %v1990_v47 = vld [vmem:[%s4712_s3 + $0x88] sm:$0xff]  ;;  %v4522_v21 = vpack.c.bf16 %v2019_v25, %v2015_v15 }
 0x535   :  { %3311 = vtanh.f32 %v1619_v19  ;;  %v4380_v19 = vpack.c.bf16 %v1994_v11, %v1990_v47  ;;  %v4524_v47 = vpack.c.bf16 %v2026_v50, %v2022_v45  ;;  %v2021_v11 = vld [vmem:[%s4712_s3 + $0x180] sm:$0xff] }
 0x536   :  { %3313 = vtanh.f32 %v1620_v46  ;;  %v1989_v46 = vld [vmem:[%s4712_s3 + $0x80] sm:$0xff] }
 0x537   :  { %v2693_v15 = vld [vmem:[%s4709_s0 + $0x5] ss:$8 sm:$0xf] }
 0x539   :  { %v3300_v29 = vpop.eup %3299 }
 0x53a   :  { %v3302_v49 = vpop.eup %3301  ;;  %v1597_v55 = vmul.f32 0.5, %v3300_v29  ;;  %v1996_v29 = vld [vmem:[%s4712_s3 + $0xb8] sm:$0xff] }
 0x53b   :  { %v3304_v56 = vpop.eup %3303  ;;  %v1598_v59 = vmul.f32 0.5, %v3302_v49  ;;  %v1993_v49 = vld [vmem:[%s4712_s3 + $0xa0] sm:$0xff] }
 0x53c   :  { %v3306_v60 = vpop.eup %3305  ;;  %v1599_v9 = vadd.f32 0.5, %v1597_v55  ;;  %v1611_v22 = vmul.f32 0.5, %v3304_v56  ;;  %v4391_v55 = vpack.c.bf16 %v1996_v29, %v1992_v12  ;;  %v4393_v56 = vpack.c.bf16 %v1993_v49, %v1989_v46  ;;  %v2025_v12 = vld [vmem:[%s4712_s3 + $0x1a0] sm:$0xff]  ;;  %v2023_v29 = vld [vmem:[%s4712_s3 + $0x190] sm:$0xff] }
 0x53d   :  { %v1600_v26 = vadd.f32 0.5, %v1598_v59  ;;  %v1612_v35 = vmul.f32 0.5, %v3306_v60  ;;  %v3308_v51 = vpop.eup %3307  ;;  %v1991_v59 = vld [vmem:[%s4712_s3 + $0x90] sm:$0xff]  ;;  %v4536_v46 = vpack.c.bf16 %v2028_v13, %v2024_v58 }
 0x53e   :  { %v1613_v44 = vadd.f32 0.5, %v1611_v22  ;;  %v3310_v57 = vpop.eup %3309  ;;  %v1633_v17 = vmul.f32 %v1599_v9, %v4233_v37  ;;  %v1995_v60 = vld [vmem:[%s4712_s3 + $0xb0] sm:$0xff]  ;;  %v1998_v9 = vld [vmem:[%s4712_s3 + $0xc8] sm:$0xff] }
 0x53f   :  { %v1614_v52 = vadd.f32 0.5, %v1612_v35  ;;  %v1634_v63 = vmul.f32 %v1600_v26, %v4235_v4  ;;  %v3312_v3 = vpop.eup %3311  ;;  %v4405_v22 = vpack.c.bf16 %v1995_v60, %v1991_v59  ;;  %v2002_v26 = vld [vmem:[%s4712_s3 + $0xe8] sm:$0xff]  ;;  %v2000_v35 = vld [vmem:[%s4712_s3 + $0xd8] sm:$0xff]  ;;  %v2027_v49 = vld [vmem:[%s4712_s3 + $0x1b0] sm:$0xff] }
 0x540   :  { %v1635_v27 = vmul.f32 %v3308_v51, %v1613_v44  ;;  %v3314_v30 = vpop.eup %3313  ;;  %v1623_v43 = vmul.f32 0.5, %v3312_v3  ;;  %v2004_v44 = vld [vmem:[%s4712_s3 + $0xf8] sm:$0xff]  ;;  %v4418_v51 = vpack.c.bf16 %v2002_v26, %v1998_v9  ;;  %v2006_v3 = vld [vmem:[%s4712_s3 + $0x108] sm:$0xff] }
 0x541   :  { %v1636_v0 = vmul.f32 %v3310_v57, %v1614_v52  ;;  %v1624_v37 = vmul.f32 0.5, %v3314_v30  ;;  %v4420_v52 = vpack.c.bf16 %v2004_v44, %v2000_v35  ;;  %v1997_v57 = vld [vmem:[%s4712_s3 + $0xc0] sm:$0xff]  ;;  %v2010_v30 = vld [vmem:[%s4712_s3 + $0x128] sm:$0xff]  ;;  %v2032_v9 = vld [vmem:[%s4712_s3 + $0x1d8] sm:$0xff]  ;;  %v4554_v35 = vpack.c.bf16 %v2025_v12, %v2021_v11 }
 0x542   :  { %v4287_v36 = vadd.f32 %v1635_v27, %v1633_v17  ;;  %v1625_v10 = vadd.f32 0.5, %v1623_v43  ;;  %v2001_v17 = vld [vmem:[%s4712_s3 + $0xe0] sm:$0xff]  ;;  %v1999_v27 = vld [vmem:[%s4712_s3 + $0xd0] sm:$0xff]  ;;  %v2030_v59 = vld [vmem:[%s4712_s3 + $0x1c8] sm:$0xff]  ;;  %v4558_v44 = vpack.c.bf16 %v2027_v49, %v2023_v29 }
 0x543   :  { %v4289_v5 = vadd.f32 %v1636_v0, %v1634_v63  ;;  %v1626_v4 = vadd.f32 0.5, %v1624_v37  ;;  %v4432_v63 = vpack.c.bf16 %v2001_v17, %v1997_v57  ;;  %v2003_v0 = vld [vmem:[%s4712_s3 + $0xf0] sm:$0xff]  ;;  %v4447_v37 = vpack.c.bf16 %v2010_v30, %v2006_v3  ;;  %v2034_v60 = vld [vmem:[%s4712_s3 + $0x1e8] sm:$0xff]  ;;  %v2036_v26 = vld [vmem:[%s4712_s3 + $0x1f8] sm:$0xff] }
 0x544   :  { %1645 = vst [vmem:[#allocation6 + $0x4] sm:$0x1] %v4287_v36  ;;  %3315 = vtanh.f32 %v4287_v36  ;;  %v4445_v43 = vpack.c.bf16 %v2003_v0, %v1999_v27  ;;  %v4560_v57 = vpack.c.bf16 %v2034_v60, %v2030_v59  ;;  %v2029_v17 = vld [vmem:[%s4712_s3 + $0x1c0] sm:$0xff]  ;;  %v4569_v0 = vpack.c.bf16 %v2036_v26, %v2032_v9  ;;  %v2031_v3 = vld [vmem:[%s4712_s3 + $0x1d0] sm:$0xff] }
 0x545   :  { %1646 = vst [vmem:[#allocation6 + $0xc] sm:$0x1] %v4289_v5  ;;  %3317 = vtanh.f32 %v4289_v5  ;;  %v2033_v27 = vld [vmem:[%s4712_s3 + $0x1e0] sm:$0xff]  ;;  %v2035_v30 = vld [vmem:[%s4712_s3 + $0x1f0] sm:$0xff] }
 0x54e   :  { %v3316_v20 = vpop.eup %3315 }
 0x54f   :  { %v3318_v48 = vpop.eup %3317  ;;  %v1641_v34 = vmul.f32 %v3316_v20, %v1625_v10  ;;  %v2008_v10 = vld [vmem:[%s4712_s3 + $0x118] sm:$0xff] }
 0x550   :  { %v1642_v24 = vmul.f32 %v3318_v48, %v1626_v4  ;;  %v2012_v20 = vld [vmem:[%s4712_s3 + $0x138] sm:$0xff]  ;;  %v2005_v4 = vld [vmem:[%s4712_s3 + $0x100] sm:$0xff] }
 0x551   :  { %1643 = vst [vmem:[#allocation4 + $0x4] sm:$0x1] %v1641_v34  ;;  %v4458_v48 = vpack.c.bf16 %v2012_v20, %v2008_v10  ;;  %v4578_v10 = vpack.c.bf16 %v2033_v27, %v2029_v17  ;;  %v4582_v20 = vpack.c.bf16 %v2035_v30, %v2031_v3 }
 0x552   :  { %1644 = vst [vmem:[#allocation4 + $0xc] sm:$0x1] %v1642_v24  ;;  %v1717_v41 = vcombine.low %v1641_v34, %v1642_v24  ;;  %v2009_v34 = vld [vmem:[%s4712_s3 + $0x120] sm:$0xff]  ;;  %v2007_v24 = vld [vmem:[%s4712_s3 + $0x110] sm:$0xff] }
 0x554   :  { %v1724_v42 = vrot.slane %v1717_v41, %v3795_v61  ;;  %v2011_v41 = vld [vmem:[%s4712_s3 + $0x130] sm:$0xff] }
 0x555   :  { %v4483_v40 = vpack.c.bf16 %v2011_v41, %v2007_v24 }
 0x556   :  { %v1731_v33 = vrot.slane %v1724_v42, %v3795_v61  ;;  %v4470_v42 = vpack.c.bf16 %v2009_v34, %v2005_v4 }
 0x558   :  { %1798 = vmatmul.mubr.f32.vlgmr.msra.gmra.mrb[10].mxu0 %v1731_v33  ;;  %1869 = vmatmul.mubr.f32.vlgmr.msra.gmra.mrb[10].mxu1 %v1731_v33  ;;  %v2014_v33 = vld [vmem:[%s4712_s3 + $0x148] sm:$0xff] }
 0x559   :  { %2119 = vmatprep.mubr.f32.mxu0 %v3427_v7  ;;  %2190 = vmatprep.mubr.f32.mxu1 %v3427_v7  ;;  %v4485_v1 = vpack.c.bf16 %v2018_v54, %v2014_v33 }
 0x55a   :  { %3088 = vmatpush1.bf16.msra.mxu0 %v4321_v62  ;;  %3120 = vmatpush1.bf16.msra.mxu1 %v4330_v14 }
 0x55b   :  { %3090 = vmatprep.subr.bf16.mxu0 %v4344_v32  ;;  %3122 = vmatprep.subr.bf16.mxu1 %v4355_v18 }
 0x55e   :  { %3092 = vmatpush1.bf16.msra.mxu0 %v4357_v39  ;;  %3124 = vmatpush1.bf16.msra.mxu1 %v4366_v28 }
 0x55f   :  { %3094 = vmatprep.subr.bf16.mxu0 %v4380_v19  ;;  %3126 = vmatprep.subr.bf16.mxu1 %v4391_v55 }
 0x562   :  { %3096 = vmatpush1.bf16.msra.mxu0 %v4393_v56  ;;  %3128 = vmatpush1.bf16.msra.mxu1 %v4405_v22 }
 0x563   :  { %3098 = vmatprep.subr.bf16.mxu0 %v4418_v51  ;;  %3130 = vmatprep.subr.bf16.mxu1 %v4420_v52 }
 0x566   :  { %3100 = vmatpush1.bf16.msra.mxu0 %v4432_v63  ;;  %3132 = vmatpush1.bf16.msra.mxu1 %v4445_v43 }
 0x567   :  { %3102 = vmatprep.subr.bf16.mxu0 %v4447_v37  ;;  %3134 = vmatprep.subr.bf16.mxu1 %v4458_v48 }
 0x56a   :  { %3104 = vmatpush1.bf16.msra.mxu0 %v4470_v42  ;;  %3136 = vmatpush1.bf16.msra.mxu1 %v4483_v40 }
 0x56b   :  { %3106 = vmatprep.subr.bf16.mxu0 %v4485_v1  ;;  %3138 = vmatprep.subr.bf16.mxu1 %v4497_v8 }
 0x56e   :  { %3108 = vmatpush1.bf16.msra.mxu0 %v4518_v16  ;;  %3140 = vmatpush1.bf16.msra.mxu1 %v4522_v21 }
 0x56f   :  { %3110 = vmatprep.subr.bf16.mxu0 %v4524_v47  ;;  %3142 = vmatprep.subr.bf16.mxu1 %v4536_v46 }
 0x572   :  { %3112 = vmatpush1.bf16.msra.mxu0 %v4554_v35  ;;  %3144 = vmatpush1.bf16.msra.mxu1 %v4558_v44 }
 0x573   :  { %3114 = vmatprep.subr.bf16.mxu0 %v4560_v57  ;;  %3146 = vmatprep.subr.bf16.mxu1 %v4569_v0 }
 0x576   :  { %3116 = vmatpush1.bf16.msra.mxu0 %v4578_v10  ;;  %3148 = vmatpush1.bf16.msra.mxu1 %v4582_v20 }
 0x577   :  { %3150 = vmatprep.subr.bf16.mxu0 %v4308_v53  ;;  %3182 = vmatprep.subr.bf16.mxu1 %v4319_v38  ;;  %v2694_v53 = vld [vmem:[%s4709_s0 + $0x25] ss:$8 sm:$0xf] }
 0x62b   :  { %v1799_v4 = vpop.f32.mrb[10].mxu0  ;;  %v1870_v34 = vpop.f32.mrb[10].mxu1 }
 0x62c   :  { %v1801_v24 = vpop.f32.mrb[11].mxu0  ;;  %v1872_v41 = vpop.f32.mrb[11].mxu1 }
 0x62d   :  { %v1879_v33 = vcombine.low %v1799_v4, %v1801_v24  ;;  %v1880_v54 = vcombine.low %v1870_v34, %v1872_v41 }
 0x62f   :  { %v1887_v31 = vrot.slane %v1879_v33, %v3795_v61  ;;  %v1894_v6 = vrot.slane %v1880_v54, %v3795_v61 }
 0x631   :  { %v1895_v23 = vcombine.low %v1887_v31, %v1894_v6  ;;  %v1896_v2 = vcombine.high %v1887_v31, %v1894_v6 }
 0x633   :  { %v1903_v38 = vrot.slane %v1895_v23, %v3795_v61  ;;  %v1910_v25 = vrot.slane %v1896_v2, %v3795_v61 }
 0x635   :  { %v1913_v45 = vadd.f32 %v2693_v15, %v1903_v38  ;;  %v1914_v50 = vadd.f32 %v2694_v53, %v1910_v25 }
 0x637   :  { %v1915_v58 = vmul.f32 0.5, %v1913_v45  ;;  %v1916_v13 = vmul.f32 0.5, %v1914_v50  ;;  %v1925_v11 = vrot.slane %v1913_v45, 1  ;;  %v1926_v12 = vrot.slane %v1914_v50, 1 }
 0x638   :  { %v1949_v59 = vrot.slane %v1913_v45, 3  ;;  %v1950_v60 = vrot.slane %v1914_v50, 3  ;;  %v1937_v9 = vrot.slane %v1913_v45, 2  ;;  %v1938_v26 = vrot.slane %v1914_v50, 2 }
 0x639   :  { %3319 = vtanh.f32 %v1915_v58  ;;  %v1929_v29 = vmul.f32 0.5, %v1925_v11  ;;  %v1930_v49 = vmul.f32 0.5, %v1926_v12 }
 0x63a   :  { %3321 = vtanh.f32 %v1916_v13  ;;  %v1941_v17 = vmul.f32 0.5, %v1937_v9  ;;  %v1942_v3 = vmul.f32 0.5, %v1938_v26 }
 0x63b   :  { %3323 = vtanh.f32 %v1929_v29 }
 0x63c   :  { %3325 = vtanh.f32 %v1930_v49 }
 0x63d   :  { %3327 = vtanh.f32 %v1949_v59 }
 0x63e   :  { %3329 = vtanh.f32 %v1950_v60 }
 0x63f   :  { %3331 = vtanh.f32 %v1941_v17 }
 0x640   :  { %3333 = vtanh.f32 %v1942_v3 }
 0x643   :  { %v3320_v27 = vpop.eup %3319 }
 0x644   :  { %v3322_v30 = vpop.eup %3321  ;;  %v1919_v4 = vmul.f32 0.5, %v3320_v27 }
 0x645   :  { %v3324_v34 = vpop.eup %3323  ;;  %v1920_v24 = vmul.f32 0.5, %v3322_v30 }
 0x646   :  { %v3326_v41 = vpop.eup %3325  ;;  %v1921_v33 = vadd.f32 0.5, %v1919_v4  ;;  %v1933_v54 = vmul.f32 0.5, %v3324_v34 }
 0x647   :  { %v1922_v31 = vadd.f32 0.5, %v1920_v24  ;;  %v1934_v6 = vmul.f32 0.5, %v3326_v41  ;;  %v3328_v2 = vpop.eup %3327 }
 0x648   :  { %v1935_v23 = vadd.f32 0.5, %v1933_v54  ;;  %v3330_v53 = vpop.eup %3329  ;;  %v1955_v38 = vmul.f32 %v1921_v33, %v4287_v36 }
 0x649   :  { %v1936_v15 = vadd.f32 0.5, %v1934_v6  ;;  %v1956_v45 = vmul.f32 %v1922_v31, %v4289_v5  ;;  %v3332_v11 = vpop.eup %3331 }
 0x64a   :  { %v1957_v25 = vmul.f32 %v3328_v2, %v1935_v23  ;;  %v3334_v12 = vpop.eup %3333  ;;  %v1945_v29 = vmul.f32 0.5, %v3332_v11 }
 0x64b   :  { %v1958_v50 = vmul.f32 %v3330_v53, %v1936_v15  ;;  %v1946_v36 = vmul.f32 0.5, %v3334_v12 }
 0x64c   :  { %v4601_v58 = vadd.f32 %v1957_v25, %v1955_v38  ;;  %v1947_v49 = vadd.f32 0.5, %v1945_v29 }
 0x64d   :  { %v4603_v13 = vadd.f32 %v1958_v50, %v1956_v45  ;;  %v1948_v5 = vadd.f32 0.5, %v1946_v36 }
 0x64e   :  { %1967 = vst [vmem:[#allocation6 + $0x5] sm:$0x1] %v4601_v58  ;;  %3335 = vtanh.f32 %v4601_v58 }
 0x64f   :  { %1968 = vst [vmem:[#allocation6 + $0xd] sm:$0x1] %v4603_v13  ;;  %3337 = vtanh.f32 %v4603_v13 }
 0x658   :  { %v3336_v59 = vpop.eup %3335 }
 0x659   :  { %v3338_v60 = vpop.eup %3337  ;;  %v1963_v9 = vmul.f32 %v3336_v59, %v1947_v49 }
 0x65a   :  { %v1964_v26 = vmul.f32 %v3338_v60, %v1948_v5 }
 0x65b   :  { %1965 = vst [vmem:[#allocation4 + $0x5] sm:$0x1] %v1963_v9 }
 0x65c   :  { %1966 = vst [vmem:[#allocation4 + $0xd] sm:$0x1] %v1964_v26  ;;  %v2039_v17 = vcombine.low %v1963_v9, %v1964_v26 }
 0x65e   :  { %v2046_v27 = vrot.slane %v2039_v17, %v3795_v61 }
 0x660   :  { %v2053_v3 = vrot.slane %v2046_v27, %v3795_v61 }
 0x662   :  { %2120 = vmatmul.mubr.f32.vlgmr.msra.gmra.mrb[12].mxu0 %v2053_v3  ;;  %2191 = vmatmul.mubr.f32.vlgmr.msra.gmra.mrb[12].mxu1 %v2053_v3 }
 0x663   :  { %3152 = vmatpush1.bf16.msra.mxu0 %v4321_v62  ;;  %3184 = vmatpush1.bf16.msra.mxu1 %v4330_v14 }
 0x664   :  { %3154 = vmatprep.subr.bf16.mxu0 %v4344_v32  ;;  %3186 = vmatprep.subr.bf16.mxu1 %v4355_v18 }
 0x665   :  { %2441 = vmatprep.mubr.f32.mxu0 %v3427_v7  ;;  %2512 = vmatprep.mubr.f32.mxu1 %v3427_v7 }
 0x667   :  { %3156 = vmatpush1.bf16.msra.mxu0 %v4357_v39  ;;  %3188 = vmatpush1.bf16.msra.mxu1 %v4366_v28 }
 0x668   :  { %3158 = vmatprep.subr.bf16.mxu0 %v4380_v19  ;;  %3190 = vmatprep.subr.bf16.mxu1 %v4391_v55 }
 0x66b   :  { %3160 = vmatpush1.bf16.msra.mxu0 %v4393_v56  ;;  %3192 = vmatpush1.bf16.msra.mxu1 %v4405_v22  ;;  %v2695_v22 = vld [vmem:[%s4709_s0 + $0x6] ss:$8 sm:$0xf] }
 0x66c   :  { %3162 = vmatprep.subr.bf16.mxu0 %v4418_v51  ;;  %3194 = vmatprep.subr.bf16.mxu1 %v4420_v52  ;;  %v2696_v51 = vld [vmem:[%s4709_s0 + $0x26] ss:$8 sm:$0xf] }
 0x66f   :  { %3164 = vmatpush1.bf16.msra.mxu0 %v4432_v63  ;;  %3196 = vmatpush1.bf16.msra.mxu1 %v4445_v43 }
 0x670   :  { %3166 = vmatprep.subr.bf16.mxu0 %v4447_v37  ;;  %3198 = vmatprep.subr.bf16.mxu1 %v4458_v48 }
 0x673   :  { %3168 = vmatpush1.bf16.msra.mxu0 %v4470_v42  ;;  %3200 = vmatpush1.bf16.msra.mxu1 %v4483_v40 }
 0x674   :  { %3170 = vmatprep.subr.bf16.mxu0 %v4485_v1  ;;  %3202 = vmatprep.subr.bf16.mxu1 %v4497_v8 }
 0x677   :  { %3172 = vmatpush1.bf16.msra.mxu0 %v4518_v16  ;;  %3204 = vmatpush1.bf16.msra.mxu1 %v4522_v21 }
 0x678   :  { %3174 = vmatprep.subr.bf16.mxu0 %v4524_v47  ;;  %3206 = vmatprep.subr.bf16.mxu1 %v4536_v46 }
 0x67b   :  { %3176 = vmatpush1.bf16.msra.mxu0 %v4554_v35  ;;  %3208 = vmatpush1.bf16.msra.mxu1 %v4558_v44 }
 0x67c   :  { %3178 = vmatprep.subr.bf16.mxu0 %v4560_v57  ;;  %3210 = vmatprep.subr.bf16.mxu1 %v4569_v0 }
 0x67f   :  { %3180 = vmatpush1.bf16.msra.mxu0 %v4578_v10  ;;  %3212 = vmatpush1.bf16.msra.mxu1 %v4582_v20 }
 0x735   :  { %v2121_v7 = vpop.f32.mrb[12].mxu0  ;;  %v2192_v62 = vpop.f32.mrb[12].mxu1 }
 0x736   :  { %v2123_v14 = vpop.f32.mrb[13].mxu0  ;;  %v2194_v32 = vpop.f32.mrb[13].mxu1 }
 0x737   :  { %v2201_v18 = vcombine.low %v2121_v7, %v2123_v14  ;;  %v2202_v39 = vcombine.low %v2192_v62, %v2194_v32 }
 0x739   :  { %v2209_v28 = vrot.slane %v2201_v18, %v3795_v61  ;;  %v2216_v19 = vrot.slane %v2202_v39, %v3795_v61 }
 0x73b   :  { %v2217_v55 = vcombine.low %v2209_v28, %v2216_v19  ;;  %v2218_v56 = vcombine.high %v2209_v28, %v2216_v19 }
 0x73d   :  { %v2225_v52 = vrot.slane %v2217_v55, %v3795_v61  ;;  %v2232_v63 = vrot.slane %v2218_v56, %v3795_v61  ;;  %v2697_v55 = vld [vmem:[%s4709_s0 + $0x7] ss:$8 sm:$0xf] }
 0x73e   :  { %v2698_v56 = vld [vmem:[%s4709_s0 + $0x27] ss:$8 sm:$0xf]  ;;  %s3429_s0 = smov [#allocation6]  }
 0x73f   :  { %v2235_v43 = vadd.f32 %v2695_v22, %v2225_v52  ;;  %v2236_v37 = vadd.f32 %v2696_v51, %v2232_v63  ;;  %s2668_s14 = sshll.u32 %s3429_s0, 4  ;;  %s2669_s14 = int_to_ptr.vmem [resolvable:$true] %s2668_s14 }
 0x740   :  { %s3379_s15 = scalar_lea.vmem %s2669_s14, 256  ;;  %p3384_p1 = scmp.lt.s32.totalorder %s2669_s14, %s2669_s14 }
 0x741   :  { %v2237_v48 = vmul.f32 0.5, %v2235_v43  ;;  %v2238_v42 = vmul.f32 0.5, %v2236_v37  ;;  %v2247_v40 = vrot.slane %v2235_v43, 1  ;;  %v2248_v1 = vrot.slane %v2236_v37, 1  ;;  %p3380_p0 = scmp.ne.s32.totalorder %s2669_s14, %s3379_s15  ;;  %p3385_p2 = scmp.lt.s32.totalorder %s3379_s15, %s3379_s15 }
 0x742   :  { %v2271_v21 = vrot.slane %v2235_v43, 3  ;;  %v2272_v47 = vrot.slane %v2236_v37, 3  ;;  %v2259_v46 = vrot.slane %v2235_v43, 2  ;;  %v2260_v35 = vrot.slane %v2236_v37, 2 }
 0x743   :  { %3339 = vtanh.f32 %v2237_v48  ;;  %v2251_v8 = vmul.f32 0.5, %v2247_v40  ;;  %v2252_v16 = vmul.f32 0.5, %v2248_v1  ;;  %p3386_p3 = por %p3385_p2, %p3384_p1 }
 0x744   :  { %3341 = vtanh.f32 %v2238_v42  ;;  %v2263_v44 = vmul.f32 0.5, %v2259_v46  ;;  %v2264_v0 = vmul.f32 0.5, %v2260_v35 }
 0x745   :  { %3343 = vtanh.f32 %v2251_v8  ;;  %p3387_p4 = pnand %p3386_p3, %p3380_p0 }
 0x746   :  { %3345 = vtanh.f32 %v2252_v16 }
 0x747   :  { %3347 = vtanh.f32 %v2271_v21 }
 0x748   :  { %3349 = vtanh.f32 %v2272_v47 }
 0x749   :  { %3351 = vtanh.f32 %v2263_v44 }
 0x74a   :  { %3353 = vtanh.f32 %v2264_v0 }
 0x74d   :  { %v3340_v57 = vpop.eup %3339 }
 0x74e   :  { %v3342_v10 = vpop.eup %3341  ;;  %v2241_v20 = vmul.f32 0.5, %v3340_v57 }
 0x74f   :  { %v3344_v30 = vpop.eup %3343  ;;  %v2242_v4 = vmul.f32 0.5, %v3342_v10 }
 0x750   :  { %v3346_v34 = vpop.eup %3345  ;;  %v2243_v24 = vadd.f32 0.5, %v2241_v20  ;;  %v2255_v41 = vmul.f32 0.5, %v3344_v30 }
 0x751   :  { %v2244_v33 = vadd.f32 0.5, %v2242_v4  ;;  %v2256_v54 = vmul.f32 0.5, %v3346_v34  ;;  %v3348_v6 = vpop.eup %3347 }
 0x752   :  { %v2257_v31 = vadd.f32 0.5, %v2255_v41  ;;  %v3350_v2 = vpop.eup %3349  ;;  %v2277_v15 = vmul.f32 %v2243_v24, %v4601_v58 }
 0x753   :  { %v2258_v23 = vadd.f32 0.5, %v2256_v54  ;;  %v2278_v38 = vmul.f32 %v2244_v33, %v4603_v13  ;;  %v3352_v11 = vpop.eup %3351 }
 0x754   :  { %v2279_v53 = vmul.f32 %v3348_v6, %v2257_v31  ;;  %v3354_v12 = vpop.eup %3353  ;;  %v2267_v29 = vmul.f32 0.5, %v3352_v11 }
 0x755   :  { %v2280_v25 = vmul.f32 %v3350_v2, %v2258_v23  ;;  %v2268_v58 = vmul.f32 0.5, %v3354_v12 }
 0x756   :  { %v4655_v45 = vadd.f32 %v2279_v53, %v2277_v15  ;;  %v2269_v36 = vadd.f32 0.5, %v2267_v29 }
 0x757   :  { %v4657_v50 = vadd.f32 %v2280_v25, %v2278_v38  ;;  %v2270_v13 = vadd.f32 0.5, %v2268_v58 }
 0x758   :  { %2289 = vst [vmem:[#allocation6 + $0x6] sm:$0x1] %v4655_v45  ;;  %3355 = vtanh.f32 %v4655_v45 }
 0x759   :  { %2290 = vst [vmem:[#allocation6 + $0xe] sm:$0x1] %v4657_v50  ;;  %3357 = vtanh.f32 %v4657_v50 }
 0x762   :  { %v3356_v49 = vpop.eup %3355 }
 0x763   :  { %v3358_v59 = vpop.eup %3357  ;;  %v2285_v5 = vmul.f32 %v3356_v49, %v2269_v36 }
 0x764   :  { %v2286_v60 = vmul.f32 %v3358_v59, %v2270_v13 }
 0x765   :  { %2287 = vst [vmem:[#allocation4 + $0x6] sm:$0x1] %v2285_v5 }
 0x766   :  { %2288 = vst [vmem:[#allocation4 + $0xe] sm:$0x1] %v2286_v60  ;;  %v2361_v9 = vcombine.low %v2285_v5, %v2286_v60 }
 0x768   :  { %v2368_v26 = vrot.slane %v2361_v9, %v3795_v61 }
 0x76a   :  { %v2375_v17 = vrot.slane %v2368_v26, %v3795_v61 }
 0x76c   :  { %2442 = vmatmul.mubr.f32.vlgmr.msra.gmra.mrb[14].mxu0 %v2375_v17  ;;  %2513 = vmatmul.mubr.f32.vlgmr.msra.gmra.mrb[14].mxu1 %v2375_v17 }
 0x83f   :  { %v2443_v27 = vpop.f32.mrb[14].mxu0  ;;  %v2514_v3 = vpop.f32.mrb[14].mxu1 }
 0x840   :  { %v2445_v7 = vpop.f32.mrb[15].mxu0  ;;  %v2516_v62 = vpop.f32.mrb[15].mxu1 }
 0x841   :  { %v2523_v14 = vcombine.low %v2443_v27, %v2445_v7  ;;  %v2524_v32 = vcombine.low %v2514_v3, %v2516_v62 }
 0x843   :  { %v2531_v18 = vrot.slane %v2523_v14, %v3795_v61  ;;  %v2538_v39 = vrot.slane %v2524_v32, %v3795_v61 }
 0x845   :  { %v2539_v28 = vcombine.low %v2531_v18, %v2538_v39  ;;  %v2540_v19 = vcombine.high %v2531_v18, %v2538_v39 }
 0x847   :  { %v2547_v22 = vrot.slane %v2539_v28, %v3795_v61  ;;  %v2554_v51 = vrot.slane %v2540_v19, %v3795_v61 }
 0x849   :  { %v2557_v52 = vadd.f32 %v2697_v55, %v2547_v22  ;;  %v2558_v63 = vadd.f32 %v2698_v56, %v2554_v51 }
 0x84b   :  { %v2559_v43 = vmul.f32 0.5, %v2557_v52  ;;  %v2560_v37 = vmul.f32 0.5, %v2558_v63  ;;  %v2569_v48 = vrot.slane %v2557_v52, 1  ;;  %v2570_v42 = vrot.slane %v2558_v63, 1 }
 0x84c   :  { %v2593_v8 = vrot.slane %v2557_v52, 3  ;;  %v2594_v16 = vrot.slane %v2558_v63, 3  ;;  %v2581_v21 = vrot.slane %v2557_v52, 2  ;;  %v2582_v47 = vrot.slane %v2558_v63, 2 }
 0x84d   :  { %3359 = vtanh.f32 %v2559_v43  ;;  %v2573_v40 = vmul.f32 0.5, %v2569_v48  ;;  %v2574_v1 = vmul.f32 0.5, %v2570_v42 }
 0x84e   :  { %3361 = vtanh.f32 %v2560_v37  ;;  %v2585_v46 = vmul.f32 0.5, %v2581_v21  ;;  %v2586_v44 = vmul.f32 0.5, %v2582_v47 }
 0x84f   :  { %3363 = vtanh.f32 %v2573_v40 }
 0x850   :  { %3365 = vtanh.f32 %v2574_v1 }
 0x851   :  { %3367 = vtanh.f32 %v2593_v8 }
 0x852   :  { %3369 = vtanh.f32 %v2594_v16 }
 0x853   :  { %3371 = vtanh.f32 %v2585_v46 }
 0x854   :  { %3373 = vtanh.f32 %v2586_v44 }
 0x857   :  { %v3360_v35 = vpop.eup %3359 }
 0x858   :  { %v3362_v57 = vpop.eup %3361  ;;  %v2563_v0 = vmul.f32 0.5, %v3360_v35 }
 0x859   :  { %v3364_v10 = vpop.eup %3363  ;;  %v2564_v20 = vmul.f32 0.5, %v3362_v57 }
 0x85a   :  { %v3366_v30 = vpop.eup %3365  ;;  %v2565_v4 = vadd.f32 0.5, %v2563_v0  ;;  %v2577_v34 = vmul.f32 0.5, %v3364_v10 }
 0x85b   :  { %v2566_v24 = vadd.f32 0.5, %v2564_v20  ;;  %v2578_v41 = vmul.f32 0.5, %v3366_v30  ;;  %v3368_v54 = vpop.eup %3367 }
 0x85c   :  { %v2579_v33 = vadd.f32 0.5, %v2577_v34  ;;  %v3370_v6 = vpop.eup %3369  ;;  %v2599_v23 = vmul.f32 %v2565_v4, %v4655_v45 }
 0x85d   :  { %v2580_v31 = vadd.f32 0.5, %v2578_v41  ;;  %v2600_v15 = vmul.f32 %v2566_v24, %v4657_v50  ;;  %v3372_v12 = vpop.eup %3371 }
 0x85e   :  { %v2601_v2 = vmul.f32 %v3368_v54, %v2579_v33 }
 0x85f   :  { %v2602_v53 = vmul.f32 %v3370_v6, %v2580_v31 }
 0x860   :  { %v2603_v38 = vadd.f32 %v2601_v2, %v2599_v23 }
 0x861   :  { %v2604_v25 = vadd.f32 %v2602_v53, %v2600_v15 }
 0x862   :  { %3375 = vtanh.f32 %v2603_v38  ;;  %2611 = vst [vmem:[#allocation6 + $0x7] sm:$0x1] %v2603_v38 }
 0x863   :  { %3377 = vtanh.f32 %v2604_v25  ;;  %2612 = vst [vmem:[#allocation6 + $0xf] sm:$0x1] %v2604_v25  ;;  %v2634_v11 = vcombine.low %v2603_v38, %v2604_v25 }
 0x864   :  { %3390 = shalt.err (!%p3387_p4)
}
 0x865   :  { %s3391_s18 = scalar_lea.hbm %s4714_s5, 256 }
 0x866   :  { %p3392_p5 = scmp.ne.s32.totalorder %s4714_s5, %s3391_s18  ;;  %p3395_p6 = scmp.lt.u32.totalorder %s3391_s18, %s4714_s5 }
 0x868   :  { %p3397_p7 = pnand %p3395_p6, %p3392_p5 }
 0x86a   :  { %3400 = shalt.err (!%p3397_p7)
}
 0x86b   :  { %s3430_s23 = smov 128   ;;  %s3431_s2 = smov 8   ;;  %v3374_v45 = vpop.eup %3373  ;;  %v2641_v50 = vrot.slane %v2634_v11, %v3795_v61  ;;  %v2589_v29 = vmul.f32 0.5, %v3372_v12 }
 0x86c   :  { %2674 = dma.vmem_to_hbm [thread:$0]  %s2669_s14, 256, %s4714_s5, [#allocation7], %s3430_s23, %s3430_s23, %s3431_s2   ;;  %v2590_v58 = vmul.f32 0.5, %v3374_v45  ;;  %v3376_v49 = vpop.eup %3375 }
 0x86d   :  { %2700 = vst.sshfl [vmem:[#allocation3] sm:$0x5 pattern:$0x73625140] %v2641_v50  ;;  %v2591_v36 = vadd.f32 0.5, %v2589_v29  ;;  %s3432_s26 = smov [#allocation4]   ;;  %v3378_v59 = vpop.eup %3377 }
 0x86e   :  { %s2656_s27 = sshll.u32 %s3432_s26, 4  ;;  %v2592_v13 = vadd.f32 0.5, %v2590_v58  ;;  %s2657_s27 = int_to_ptr.vmem [resolvable:$true] %s2656_s27 }
 0x86f   :  { %v2607_v5 = vmul.f32 %v3376_v49, %v2591_v36  ;;  %s3401_s28 = scalar_lea.vmem %s2657_s27, 256  ;;  %p3406_p9 = scmp.lt.s32.totalorder %s2657_s27, %s2657_s27 }
 0x870   :  { %v2608_v60 = vmul.f32 %v3378_v59, %v2592_v13  ;;  %p3402_p8 = scmp.ne.s32.totalorder %s2657_s27, %s3401_s28  ;;  %p3407_p10 = scmp.lt.s32.totalorder %s3401_s28, %s3401_s28 }
 0x871   :  { %2609 = vst [vmem:[#allocation4 + $0x7] sm:$0x1] %v2607_v5 }
 0x872   :  { %2610 = vst [vmem:[#allocation4 + $0xf] sm:$0x1] %v2608_v60  ;;  %v2615_v9 = vcombine.low %v2607_v5, %v2608_v60  ;;  %p3408_p11 = por %p3407_p10, %p3406_p9 }
 0x874   :  { %p3409_p12 = pnand %p3408_p11, %p3402_p8 }
 0x876   :  { %3412 = shalt.err (!%p3409_p12)
}
 0x877   :  { %s3413_s29 = scalar_lea.hbm %s4713_s4, 256 }
 0x878   :  { %p3414_p13 = scmp.ne.s32.totalorder %s4713_s4, %s3413_s29  ;;  %p3417_p0 = scmp.lt.u32.totalorder %s3413_s29, %s4713_s4 }
 0x87a   :  { %p3419_p1 = pnand %p3417_p0, %p3414_p13 }
 0x87c   :  { %3422 = shalt.err (!%p3419_p1)
}
 0x87d   :  { %2662 = dma.vmem_to_hbm [thread:$0]  %s2657_s27, 256, %s4713_s4, [#allocation5], %s3430_s23, %s3430_s23, %s3431_s2   ;;  %v2622_v26 = vrot.slane %v2615_v9, %v3795_v61 }
 0x87f   :  { %2699 = vst.sshfl [vmem:[#allocation2] sm:$0x5 pattern:$0x73625140] %v2622_v26 }
 0x880   :  { %3423 = dma.done.wait [#allocation5], 256  }
 0x881   :  { %3424 = vsyncadd [#allocation5], 4294967040 }
 0x882   :  { %3425 = dma.done.wait [#allocation7], 256  }
 0x883   :  { %3426 = vsyncadd [#allocation7], 4294967040 }
 0x884   :  { %2681 = vsyncpa [#allocation5], 1 }
 0x885   :  { %2682 = vsyncpa [#allocation7], 1 }

</bundles_post_ra>
